<compile_context>
chip_gen: v6e
topology: v6e:2x2x1
jax: 0.10.0
libtpu: 0.0.40
codegen_flags: <defaults>
</compile_context>

<pallas_src>
import functools

import jax
import jax.numpy as jnp
from jax.experimental import pallas as pl
from jax.experimental.pallas import tpu as pltpu

_BN_EPS = 1e-8  # nn.BatchNorm2d(..., eps=1e-08) in the reference model


def _stage_kernel(e_ref, d_ref, ep_ref, dp_ref, we_ref, wd_ref, sh_ref, al_ref,
                  o_ref, *, tt, f_in, m, sw, co, kh, kw):
    """One decoder stage on one (batch, time-block) grid cell.

    e_ref/d_ref   : (1, tt, f_in, C)   current time block of skip / prev output
    ep_ref/dp_ref : (1, 1,  f_in, C)   time row just before this block (halo)
    we_ref/wd_ref : (C, kh*kw*co)      BN-folded, tap-concatenated bf16 weights
    sh_ref/al_ref : (1, sw*co)         folded bias+BN shift / PReLU alpha (f32)
    o_ref         : (1, tt, m, sw*co)  polyphase channel-interleaved output
    """
    first = pl.program_id(1) == 0
    keep_prev = jnp.where(first, 0.0, 1.0)          # zero the halo for t == 0
    n_wide = kh * kw * co

    accs = [jnp.zeros((tt, m, co), jnp.float32) for _ in range(sw)]

    for x_ref, p_ref, w_ref in ((e_ref, ep_ref, we_ref), (d_ref, dp_ref, wd_ref)):
        c_in = x_ref.shape[-1]
        blk = x_ref[0].reshape(tt * f_in, c_in)                     # bf16
        prev = p_ref[0, 0] * keep_prev.astype(p_ref.dtype)          # (f_in, C)
        w = w_ref[...]

        # One wide MXU matmul per source: all kh*kw taps along the N axis.
        y_blk = jnp.dot(blk, w, preferred_element_type=jnp.float32)
        y_blk = y_blk.reshape(tt, f_in, n_wide)                     # rows t
        y_prev = jnp.dot(prev, w, preferred_element_type=jnp.float32)
        y_prev = y_prev.reshape(1, f_in, n_wide)
        if tt > 1:                                                  # rows t-1
            y_shift = jnp.concatenate([y_prev, y_blk[:tt - 1]], axis=0)
        else:
            y_shift = y_prev

        # Combine taps: static freq shift (zero pad) + add, polyphase split.
        for a in range(kh):                    # time tap: a=0 -> x[t], a=1 -> x[t-1]
            ya = y_blk if a == 0 else y_shift
            for k in range(kw):                # freq tap
                g = a * kw + k
                yt = ya[:, :, g * co:(g + 1) * co]                  # (tt, f_in, co)
                r, c = k % sw, k // sw         # output parity / freq shift
                length = min(f_in, m - c)
                pieces = []
                if c:
                    pieces.append(jnp.zeros((tt, c, co), jnp.float32))
                pieces.append(yt[:, :length, :])
                if m - c - length:
                    pieces.append(jnp.zeros((tt, m - c - length, co), jnp.float32))
                contrib = pieces[0] if len(pieces) == 1 else jnp.concatenate(
                    pieces, axis=1)
                accs[r] = accs[r] + contrib

    res = accs[0] if sw == 1 else jnp.concatenate(accs, axis=-1)    # (tt, m, sw*co)
    res = res + sh_ref[0]                       # conv bias + eval-BN (folded)
    alpha = al_ref[0]
    res = jnp.where(res >= 0.0, res, alpha * res)                   # PReLU (f32)
    o_ref[0] = res.astype(o_ref.dtype)


def _decoder_stage(e, d, params, *, kh, kw, sw, crop_w, out_dtype):
    """ConvTranspose2d(+trailing crop) + BatchNorm(eval) + PReLU.

    e: (B, T, F_in, Ce) bf16 encoder skip; d: (B, T, F_in, Cd) bf16 previous
    output.  Channel split matches torch.cat([e, d], dim=1).
    """
    W, bias, gamma, beta, rmean, rvar, alpha = params
    B, T, F_in, Ce = e.shape
    Cd = d.shape[-1]
    Ci, Co, KH, KW = W.shape
    assert (KH, KW) == (kh, kw) and Ci == Ce + Cd

    f_out = sw * (F_in - 1) + kw - crop_w        # width after the trailing crop
    m = -(-f_out // sw)                          # freq bins per polyphase branch

    # Fold eval-mode BatchNorm + conv bias: y = conv(x)*scale + shift.
    scale = gamma / jnp.sqrt(rvar + _BN_EPS)
    shift = beta - rmean * scale + bias * scale
    Wf = (W * scale[None, :, None, None]).astype(jnp.float32)
    taps = [(a, k) for a in range(kh) for k in range(kw)]
    wide = jnp.concatenate([Wf[:, :, a, k] for a, k in taps], axis=1)  # (Ci, kh*kw*Co)
    we = wide[:Ce].astype(jnp.bfloat16)
    wd = wide[Ce:].astype(jnp.bfloat16)
    sh = jnp.tile(shift, sw).reshape(1, sw * Co).astype(jnp.float32)
    al = jnp.tile(alpha, sw).reshape(1, sw * Co).astype(jnp.float32)

    # Time tiling: ~1024 matmul rows per block (keeps VMEM well under the
    # 48 MiB budget even on v7x), never larger than T.
    tt = max(1, min(T, max(8, (1024 // max(F_in, 1)) // 8 * 8)))
    nt = pl.cdiv(T, tt)

    kern = functools.partial(_stage_kernel, tt=tt, f_in=F_in, m=m, sw=sw,
                             co=Co, kh=kh, kw=kw)
    blk_idx = lambda b, j: (b, j, 0, 0)
    prev_idx = lambda b, j: (b, jnp.maximum(j * tt - 1, 0), 0, 0)
    const_idx = lambda b, j: (0, 0)

    y = pl.pallas_call(
        kern,
        out_shape=jax.ShapeDtypeStruct((B, T, m, sw * Co), out_dtype),
        grid=(B, nt),
        in_specs=[
            pl.BlockSpec((1, tt, F_in, Ce), blk_idx),
            pl.BlockSpec((1, tt, F_in, Cd), blk_idx),
            pl.BlockSpec((1, 1, F_in, Ce), prev_idx),
            pl.BlockSpec((1, 1, F_in, Cd), prev_idx),
            pl.BlockSpec((Ce, kh * kw * Co), const_idx),
            pl.BlockSpec((Cd, kh * kw * Co), const_idx),
            pl.BlockSpec((1, sw * Co), const_idx),
            pl.BlockSpec((1, sw * Co), const_idx),
        ],
        out_specs=pl.BlockSpec((1, tt, m, sw * Co), blk_idx),
        compiler_params=pltpu.CompilerParams(
            dimension_semantics=("parallel", "parallel"),
            vmem_limit_bytes=48 * 1024 * 1024),
    )(e, d, e, d, we, wd, sh, al)

    # Polyphase channel-interleaved layout -> (B, T, F_out, Co): contiguous
    # reinterpretation (free); the crop drops at most one padded freq bin.
    y = y.reshape(B, T, m * sw, Co)
    if m * sw != f_out:
        y = y[:, :, :f_out, :]
    return y


def real_decoder_forward(dprnn_out, encoder_out, params):
    """Matches Real_Decoder.forward; inputs are NCHW, output is NCHW."""
    to_nhwc = lambda x: jnp.transpose(x, (0, 2, 3, 1)).astype(jnp.bfloat16)
    d = to_nhwc(dprnn_out)
    skips = [to_nhwc(t) for t in encoder_out]

    stage_cfg = [          # (skip index, kh, kw, sw, crop_w)
        (4, 2, 3, 1, 2),
        (3, 2, 3, 1, 2),
        (2, 2, 3, 1, 2),
        (1, 2, 3, 2, 1),
        (0, 2, 5, 2, 2),
    ]
    x = d
    for i, (si, kh, kw, sw, crop_w) in enumerate(stage_cfg):
        out_dtype = jnp.float32 if i == len(stage_cfg) - 1 else jnp.bfloat16
        x = _decoder_stage(skips[si], x, params[i], kh=kh, kw=kw, sw=sw,
                           crop_w=crop_w, out_dtype=out_dtype)
    return jnp.transpose(x, (0, 3, 1, 2))        # (B, 1, T, F_out) NCHW


def _init_layer(key, ci, co, kh, kw):
    """Deterministic synthetic parameters for one decoder stage."""
    ks = jax.random.split(key, 7)
    W = jax.random.normal(ks[0], (ci, co, kh, kw), jnp.float32) * 0.05
    bias = jax.random.normal(ks[1], (co,), jnp.float32) * 0.05
    gamma = 1.0 + 0.1 * jax.random.normal(ks[2], (co,), jnp.float32)
    beta = 0.1 * jax.random.normal(ks[3], (co,), jnp.float32)
    rmean = 0.1 * jax.random.normal(ks[4], (co,), jnp.float32)
    rvar = 1.0 + 0.1 * jnp.abs(jax.random.normal(ks[5], (co,), jnp.float32))
    alpha = 0.25 + 0.01 * jax.random.normal(ks[6], (co,), jnp.float32)
    return (W, bias, gamma, beta, rmean, rvar, alpha)


if __name__ == "__main__":
    key = jax.random.PRNGKey(0)
    kp, kd, k0, k1, k2, k3, k4 = jax.random.split(key, 7)

    B, T, F = 2, 8, 4   # batch, time frames, deepest freq bins
    dprnn_out = jax.random.normal(kd, (B, 128, T, F), jnp.float32)
    encoder_out = [
        jax.random.normal(k0, (B, 32, T, 2 * F), jnp.float32),   # stage-0 skip
        jax.random.normal(k1, (B, 32, T, F), jnp.float32),
        jax.random.normal(k2, (B, 32, T, F), jnp.float32),
        jax.random.normal(k3, (B, 64, T, F), jnp.float32),
        jax.random.normal(k4, (B, 128, T, F), jnp.float32),
    ]

    layer_cfg = [(256, 64, 2, 3), (128, 32, 2, 3), (64, 32, 2, 3),
                 (64, 32, 2, 3), (64, 1, 2, 5)]
    pkeys = jax.random.split(kp, 5)
    params = [_init_layer(pkeys[i], *layer_cfg[i]) for i in range(5)]

    fwd = jax.jit(real_decoder_forward)
    out = jax.block_until_ready(fwd(dprnn_out, encoder_out, params))
    assert out.shape == (B, 1, T, 4 * F + 1), out.shape
    assert out.dtype == jnp.float32
    print("KERNEL_OK")
</pallas_src>

<mosaic_0001>
module attributes {stable_mosaic.version = 11 : i64} {
  func.func @_stage_kernel(%arg0: i32, %arg1: i32, %arg2: memref<1x8x4x128xbf16, #tpu.memory_space<vmem>>, %arg3: memref<1x8x4x128xbf16, #tpu.memory_space<vmem>>, %arg4: memref<1x1x4x128xbf16, #tpu.memory_space<vmem>>, %arg5: memref<1x1x4x128xbf16, #tpu.memory_space<vmem>>, %arg6: memref<128x384xbf16, #tpu.memory_space<vmem>>, %arg7: memref<128x384xbf16, #tpu.memory_space<vmem>>, %arg8: memref<1x64xf32, #tpu.memory_space<vmem>>, %arg9: memref<1x64xf32, #tpu.memory_space<vmem>>, %arg10: memref<1x8x4x64xbf16, #tpu.memory_space<vmem>>) attributes {dimension_semantics = [#tpu.dimension_semantics<parallel>, #tpu.dimension_semantics<parallel>], iteration_bounds = array<i64: 2, 1>, scalar_prefetch = 0 : i64, scratch_operands = 0 : i64, tpu.core_type = #tpu.core_type<tc>, window_params = [{transform_indices = @transform_0, window_bounds = array<i64: 1, 8, 4, 128>}, {transform_indices = @transform_1, window_bounds = array<i64: 1, 8, 4, 128>}, {transform_indices = @transform_2, window_bounds = array<i64: 1, 1, 4, 128>}, {transform_indices = @transform_3, window_bounds = array<i64: 1, 1, 4, 128>}, {pipeline_mode = #tpu.pipeline_mode<synchronous>, transform_indices = @transform_4, window_bounds = array<i64: 128, 384>}, {pipeline_mode = #tpu.pipeline_mode<synchronous>, transform_indices = @transform_5, window_bounds = array<i64: 128, 384>}, {pipeline_mode = #tpu.pipeline_mode<synchronous>, transform_indices = @transform_6, window_bounds = array<i64: 1, 64>}, {pipeline_mode = #tpu.pipeline_mode<synchronous>, transform_indices = @transform_7, window_bounds = array<i64: 1, 64>}, {transform_indices = @transform_8, window_bounds = array<i64: 1, 8, 4, 64>}]} {
    %c0_i32 = arith.constant 0 : i32
    %0 = arith.cmpi eq, %arg1, %c0_i32 : i32
    %cst = arith.constant 0.000000e+00 : f32
    %cst_0 = arith.constant 1.000000e+00 : f32
    %1 = arith.select %0, %cst, %cst_0 : f32
    %cst_1 = arith.constant 0.000000e+00 : f32
    %2 = vector.broadcast %cst_1 : f32 to vector<8x4x64xf32>
    %c0 = arith.constant 0 : index
    %c0_2 = arith.constant 0 : index
    %c0_3 = arith.constant 0 : index
    %c0_4 = arith.constant 0 : index
    %3 = vector.load %arg2[%c0, %c0_2, %c0_3, %c0_4] : memref<1x8x4x128xbf16, #tpu.memory_space<vmem>>, vector<1x8x4x128xbf16>
    %4 = vector.shape_cast %3 : vector<1x8x4x128xbf16> to vector<8x4x128xbf16>
    %5 = vector.shape_cast %4 : vector<8x4x128xbf16> to vector<32x128xbf16>
    %c0_5 = arith.constant 0 : index
    %c0_6 = arith.constant 0 : index
    %c0_7 = arith.constant 0 : index
    %c0_8 = arith.constant 0 : index
    %6 = vector.load %arg4[%c0_5, %c0_6, %c0_7, %c0_8] : memref<1x1x4x128xbf16, #tpu.memory_space<vmem>>, vector<1x1x4x128xbf16>
    %7 = vector.shape_cast %6 : vector<1x1x4x128xbf16> to vector<4x128xbf16>
    %8 = arith.truncf %1 : f32 to bf16
    %9 = vector.broadcast %8 : bf16 to vector<4x128xbf16>
    %10 = arith.mulf %7, %9 : vector<4x128xbf16>
    %c0_9 = arith.constant 0 : index
    %c0_10 = arith.constant 0 : index
    %11 = vector.load %arg6[%c0_9, %c0_10] : memref<128x384xbf16, #tpu.memory_space<vmem>>, vector<128x384xbf16>
    %cst_11 = arith.constant dense<0.000000e+00> : vector<32x384xf32>
    %12 = tpu.matmul %5, %11, %cst_11 {dimension_numbers = #tpu.dot_dimension_numbers<[1], [0], [0], [1], [0, 0, 1, 1], [], []>} : vector<32x128xbf16>, vector<128x384xbf16>, vector<32x384xf32> -> vector<32x384xf32>
    %13 = vector.shape_cast %12 : vector<32x384xf32> to vector<8x4x384xf32>
    %cst_12 = arith.constant dense<0.000000e+00> : vector<4x384xf32>
    %14 = tpu.matmul %10, %11, %cst_12 {dimension_numbers = #tpu.dot_dimension_numbers<[1], [0], [0], [1], [0, 0, 1, 1], [], []>} : vector<4x128xbf16>, vector<128x384xbf16>, vector<4x384xf32> -> vector<4x384xf32>
    %15 = vector.shape_cast %14 : vector<4x384xf32> to vector<1x4x384xf32>
    %16 = vector.extract_strided_slice %13 {offsets = [0, 0, 0], sizes = [7, 4, 384], strides = [1, 1, 1]} : vector<8x4x384xf32> to vector<7x4x384xf32>
    %17 = tpu.concatenate %15, %16 in 0 : vector<1x4x384xf32>, vector<7x4x384xf32> -> vector<8x4x384xf32>
    %18 = vector.extract_strided_slice %13 {offsets = [0, 0, 0], sizes = [8, 4, 64], strides = [1, 1, 1]} : vector<8x4x384xf32> to vector<8x4x64xf32>
    %19 = arith.addf %2, %18 : vector<8x4x64xf32>
    %20 = vector.extract_strided_slice %13 {offsets = [0, 0, 64], sizes = [8, 4, 64], strides = [1, 1, 1]} : vector<8x4x384xf32> to vector<8x4x64xf32>
    %cst_13 = arith.constant 0.000000e+00 : f32
    %21 = vector.broadcast %cst_13 : f32 to vector<8x1x64xf32>
    %22 = vector.extract_strided_slice %20 {offsets = [0, 0, 0], sizes = [8, 3, 64], strides = [1, 1, 1]} : vector<8x4x64xf32> to vector<8x3x64xf32>
    %23 = tpu.concatenate %21, %22 in 1 : vector<8x1x64xf32>, vector<8x3x64xf32> -> vector<8x4x64xf32>
    %24 = arith.addf %19, %23 : vector<8x4x64xf32>
    %25 = vector.extract_strided_slice %13 {offsets = [0, 0, 128], sizes = [8, 4, 64], strides = [1, 1, 1]} : vector<8x4x384xf32> to vector<8x4x64xf32>
    %cst_14 = arith.constant 0.000000e+00 : f32
    %26 = vector.broadcast %cst_14 : f32 to vector<8x2x64xf32>
    %27 = vector.extract_strided_slice %25 {offsets = [0, 0, 0], sizes = [8, 2, 64], strides = [1, 1, 1]} : vector<8x4x64xf32> to vector<8x2x64xf32>
    %28 = tpu.concatenate %26, %27 in 1 : vector<8x2x64xf32>, vector<8x2x64xf32> -> vector<8x4x64xf32>
    %29 = arith.addf %24, %28 : vector<8x4x64xf32>
    %30 = vector.extract_strided_slice %17 {offsets = [0, 0, 192], sizes = [8, 4, 64], strides = [1, 1, 1]} : vector<8x4x384xf32> to vector<8x4x64xf32>
    %31 = arith.addf %29, %30 : vector<8x4x64xf32>
    %32 = vector.extract_strided_slice %17 {offsets = [0, 0, 256], sizes = [8, 4, 64], strides = [1, 1, 1]} : vector<8x4x384xf32> to vector<8x4x64xf32>
    %cst_15 = arith.constant 0.000000e+00 : f32
    %33 = vector.broadcast %cst_15 : f32 to vector<8x1x64xf32>
    %34 = vector.extract_strided_slice %32 {offsets = [0, 0, 0], sizes = [8, 3, 64], strides = [1, 1, 1]} : vector<8x4x64xf32> to vector<8x3x64xf32>
    %35 = tpu.concatenate %33, %34 in 1 : vector<8x1x64xf32>, vector<8x3x64xf32> -> vector<8x4x64xf32>
    %36 = arith.addf %31, %35 : vector<8x4x64xf32>
    %37 = vector.extract_strided_slice %17 {offsets = [0, 0, 320], sizes = [8, 4, 64], strides = [1, 1, 1]} : vector<8x4x384xf32> to vector<8x4x64xf32>
    %cst_16 = arith.constant 0.000000e+00 : f32
    %38 = vector.broadcast %cst_16 : f32 to vector<8x2x64xf32>
    %39 = vector.extract_strided_slice %37 {offsets = [0, 0, 0], sizes = [8, 2, 64], strides = [1, 1, 1]} : vector<8x4x64xf32> to vector<8x2x64xf32>
    %40 = tpu.concatenate %38, %39 in 1 : vector<8x2x64xf32>, vector<8x2x64xf32> -> vector<8x4x64xf32>
    %41 = arith.addf %36, %40 : vector<8x4x64xf32>
    %c0_17 = arith.constant 0 : index
    %c0_18 = arith.constant 0 : index
    %c0_19 = arith.constant 0 : index
    %c0_20 = arith.constant 0 : index
    %42 = vector.load %arg3[%c0_17, %c0_18, %c0_19, %c0_20] : memref<1x8x4x128xbf16, #tpu.memory_space<vmem>>, vector<1x8x4x128xbf16>
    %43 = vector.shape_cast %42 : vector<1x8x4x128xbf16> to vector<8x4x128xbf16>
    %44 = vector.shape_cast %43 : vector<8x4x128xbf16> to vector<32x128xbf16>
    %c0_21 = arith.constant 0 : index
    %c0_22 = arith.constant 0 : index
    %c0_23 = arith.constant 0 : index
    %c0_24 = arith.constant 0 : index
    %45 = vector.load %arg5[%c0_21, %c0_22, %c0_23, %c0_24] : memref<1x1x4x128xbf16, #tpu.memory_space<vmem>>, vector<1x1x4x128xbf16>
    %46 = vector.shape_cast %45 : vector<1x1x4x128xbf16> to vector<4x128xbf16>
    %47 = arith.truncf %1 : f32 to bf16
    %48 = vector.broadcast %47 : bf16 to vector<4x128xbf16>
    %49 = arith.mulf %46, %48 : vector<4x128xbf16>
    %c0_25 = arith.constant 0 : index
    %c0_26 = arith.constant 0 : index
    %50 = vector.load %arg7[%c0_25, %c0_26] : memref<128x384xbf16, #tpu.memory_space<vmem>>, vector<128x384xbf16>
    %cst_27 = arith.constant dense<0.000000e+00> : vector<32x384xf32>
    %51 = tpu.matmul %44, %50, %cst_27 {dimension_numbers = #tpu.dot_dimension_numbers<[1], [0], [0], [1], [0, 0, 1, 1], [], []>} : vector<32x128xbf16>, vector<128x384xbf16>, vector<32x384xf32> -> vector<32x384xf32>
    %52 = vector.shape_cast %51 : vector<32x384xf32> to vector<8x4x384xf32>
    %cst_28 = arith.constant dense<0.000000e+00> : vector<4x384xf32>
    %53 = tpu.matmul %49, %50, %cst_28 {dimension_numbers = #tpu.dot_dimension_numbers<[1], [0], [0], [1], [0, 0, 1, 1], [], []>} : vector<4x128xbf16>, vector<128x384xbf16>, vector<4x384xf32> -> vector<4x384xf32>
    %54 = vector.shape_cast %53 : vector<4x384xf32> to vector<1x4x384xf32>
    %55 = vector.extract_strided_slice %52 {offsets = [0, 0, 0], sizes = [7, 4, 384], strides = [1, 1, 1]} : vector<8x4x384xf32> to vector<7x4x384xf32>
    %56 = tpu.concatenate %54, %55 in 0 : vector<1x4x384xf32>, vector<7x4x384xf32> -> vector<8x4x384xf32>
    %57 = vector.extract_strided_slice %52 {offsets = [0, 0, 0], sizes = [8, 4, 64], strides = [1, 1, 1]} : vector<8x4x384xf32> to vector<8x4x64xf32>
    %58 = arith.addf %41, %57 : vector<8x4x64xf32>
    %59 = vector.extract_strided_slice %52 {offsets = [0, 0, 64], sizes = [8, 4, 64], strides = [1, 1, 1]} : vector<8x4x384xf32> to vector<8x4x64xf32>
    %cst_29 = arith.constant 0.000000e+00 : f32
    %60 = vector.broadcast %cst_29 : f32 to vector<8x1x64xf32>
    %61 = vector.extract_strided_slice %59 {offsets = [0, 0, 0], sizes = [8, 3, 64], strides = [1, 1, 1]} : vector<8x4x64xf32> to vector<8x3x64xf32>
    %62 = tpu.concatenate %60, %61 in 1 : vector<8x1x64xf32>, vector<8x3x64xf32> -> vector<8x4x64xf32>
    %63 = arith.addf %58, %62 : vector<8x4x64xf32>
    %64 = vector.extract_strided_slice %52 {offsets = [0, 0, 128], sizes = [8, 4, 64], strides = [1, 1, 1]} : vector<8x4x384xf32> to vector<8x4x64xf32>
    %cst_30 = arith.constant 0.000000e+00 : f32
    %65 = vector.broadcast %cst_30 : f32 to vector<8x2x64xf32>
    %66 = vector.extract_strided_slice %64 {offsets = [0, 0, 0], sizes = [8, 2, 64], strides = [1, 1, 1]} : vector<8x4x64xf32> to vector<8x2x64xf32>
    %67 = tpu.concatenate %65, %66 in 1 : vector<8x2x64xf32>, vector<8x2x64xf32> -> vector<8x4x64xf32>
    %68 = arith.addf %63, %67 : vector<8x4x64xf32>
    %69 = vector.extract_strided_slice %56 {offsets = [0, 0, 192], sizes = [8, 4, 64], strides = [1, 1, 1]} : vector<8x4x384xf32> to vector<8x4x64xf32>
    %70 = arith.addf %68, %69 : vector<8x4x64xf32>
    %71 = vector.extract_strided_slice %56 {offsets = [0, 0, 256], sizes = [8, 4, 64], strides = [1, 1, 1]} : vector<8x4x384xf32> to vector<8x4x64xf32>
    %cst_31 = arith.constant 0.000000e+00 : f32
    %72 = vector.broadcast %cst_31 : f32 to vector<8x1x64xf32>
    %73 = vector.extract_strided_slice %71 {offsets = [0, 0, 0], sizes = [8, 3, 64], strides = [1, 1, 1]} : vector<8x4x64xf32> to vector<8x3x64xf32>
    %74 = tpu.concatenate %72, %73 in 1 : vector<8x1x64xf32>, vector<8x3x64xf32> -> vector<8x4x64xf32>
    %75 = arith.addf %70, %74 : vector<8x4x64xf32>
    %76 = vector.extract_strided_slice %56 {offsets = [0, 0, 320], sizes = [8, 4, 64], strides = [1, 1, 1]} : vector<8x4x384xf32> to vector<8x4x64xf32>
    %cst_32 = arith.constant 0.000000e+00 : f32
    %77 = vector.broadcast %cst_32 : f32 to vector<8x2x64xf32>
    %78 = vector.extract_strided_slice %76 {offsets = [0, 0, 0], sizes = [8, 2, 64], strides = [1, 1, 1]} : vector<8x4x64xf32> to vector<8x2x64xf32>
    %79 = tpu.concatenate %77, %78 in 1 : vector<8x2x64xf32>, vector<8x2x64xf32> -> vector<8x4x64xf32>
    %80 = arith.addf %75, %79 : vector<8x4x64xf32>
    %c0_33 = arith.constant 0 : index
    %c0_34 = arith.constant 0 : index
    %81 = vector.load %arg8[%c0_33, %c0_34] : memref<1x64xf32, #tpu.memory_space<vmem>>, vector<1x64xf32>
    %82 = vector.shape_cast %81 : vector<1x64xf32> to vector<64xf32>
    %83 = vector.shape_cast %82 : vector<64xf32> to vector<1x1x64xf32>
    %84 = vector.broadcast %83 : vector<1x1x64xf32> to vector<8x4x64xf32>
    %85 = arith.addf %80, %84 : vector<8x4x64xf32>
    %c0_35 = arith.constant 0 : index
    %c0_36 = arith.constant 0 : index
    %86 = vector.load %arg9[%c0_35, %c0_36] : memref<1x64xf32, #tpu.memory_space<vmem>>, vector<1x64xf32>
    %87 = vector.shape_cast %86 : vector<1x64xf32> to vector<64xf32>
    %cst_37 = arith.constant 0.000000e+00 : f32
    %88 = vector.broadcast %cst_37 : f32 to vector<8x4x64xf32>
    %89 = arith.cmpf oge, %85, %88 : vector<8x4x64xf32>
    %90 = vector.shape_cast %87 : vector<64xf32> to vector<1x1x64xf32>
    %91 = vector.broadcast %90 : vector<1x1x64xf32> to vector<8x4x64xf32>
    %92 = arith.mulf %91, %85 : vector<8x4x64xf32>
    %93 = arith.select %89, %85, %92 : vector<8x4x64xi1>, vector<8x4x64xf32>
    %94 = arith.truncf %93 : vector<8x4x64xf32> to vector<8x4x64xbf16>
    %c0_38 = arith.constant 0 : index
    %c0_39 = arith.constant 0 : index
    %c0_40 = arith.constant 0 : index
    %c0_41 = arith.constant 0 : index
    %95 = vector.load %arg10[%c0_38, %c0_39, %c0_40, %c0_41] : memref<1x8x4x64xbf16, #tpu.memory_space<vmem>>, vector<1x8x4x64xbf16>
    %96 = vector.shape_cast %95 : vector<1x8x4x64xbf16> to vector<8x4x64xbf16>
    %97 = vector.shape_cast %94 : vector<8x4x64xbf16> to vector<1x8x4x64xbf16>
    tpu.vector_store %arg10[%c0_38, %c0_39, %c0_40, %c0_41], %97 {strides = array<i32>} : memref<1x8x4x64xbf16, #tpu.memory_space<vmem>>, vector<1x8x4x64xbf16>,
    return
  }
  func.func @transform_0(%arg0: i32, %arg1: i32) -> (i32, i32, i32, i32) {
    %c0_i32 = arith.constant 0 : i32
    %c0_i32_0 = arith.constant 0 : i32
    %c0_i32_1 = arith.constant 0 : i32
    return %arg0, %arg1, %c0_i32, %c0_i32_0 : i32, i32, i32, i32
  }
  func.func @transform_1(%arg0: i32, %arg1: i32) -> (i32, i32, i32, i32) {
    %c0_i32 = arith.constant 0 : i32
    %c0_i32_0 = arith.constant 0 : i32
    %c0_i32_1 = arith.constant 0 : i32
    return %arg0, %arg1, %c0_i32, %c0_i32_0 : i32, i32, i32, i32
  }
  func.func @transform_2(%arg0: i32, %arg1: i32) -> (i32, i32, i32, i32) {
    %c8_i32 = arith.constant 8 : i32
    %0 = arith.muli %arg1, %c8_i32 : i32
    %c1_i32 = arith.constant 1 : i32
    %1 = arith.subi %0, %c1_i32 : i32
    %c0_i32 = arith.constant 0 : i32
    %2 = arith.maxsi %1, %c0_i32 : i32
    %c0_i32_0 = arith.constant 0 : i32
    %c0_i32_1 = arith.constant 0 : i32
    %c0_i32_2 = arith.constant 0 : i32
    return %arg0, %2, %c0_i32_0, %c0_i32_1 : i32, i32, i32, i32
  }
  func.func @transform_3(%arg0: i32, %arg1: i32) -> (i32, i32, i32, i32) {
    %c8_i32 = arith.constant 8 : i32
    %0 = arith.muli %arg1, %c8_i32 : i32
    %c1_i32 = arith.constant 1 : i32
    %1 = arith.subi %0, %c1_i32 : i32
    %c0_i32 = arith.constant 0 : i32
    %2 = arith.maxsi %1, %c0_i32 : i32
    %c0_i32_0 = arith.constant 0 : i32
    %c0_i32_1 = arith.constant 0 : i32
    %c0_i32_2 = arith.constant 0 : i32
    return %arg0, %2, %c0_i32_0, %c0_i32_1 : i32, i32, i32, i32
  }
  func.func @transform_4(%arg0: i32, %arg1: i32) -> (i32, i32) {
    %c0_i32 = arith.constant 0 : i32
    %c0_i32_0 = arith.constant 0 : i32
    %c0_i32_1 = arith.constant 0 : i32
    return %c0_i32, %c0_i32_0 : i32, i32
  }
  func.func @transform_5(%arg0: i32, %arg1: i32) -> (i32, i32) {
    %c0_i32 = arith.constant 0 : i32
    %c0_i32_0 = arith.constant 0 : i32
    %c0_i32_1 = arith.constant 0 : i32
    return %c0_i32, %c0_i32_0 : i32, i32
  }
  func.func @transform_6(%arg0: i32, %arg1: i32) -> (i32, i32) {
    %c0_i32 = arith.constant 0 : i32
    %c0_i32_0 = arith.constant 0 : i32
    %c0_i32_1 = arith.constant 0 : i32
    return %c0_i32, %c0_i32_0 : i32, i32
  }
  func.func @transform_7(%arg0: i32, %arg1: i32) -> (i32, i32) {
    %c0_i32 = arith.constant 0 : i32
    %c0_i32_0 = arith.constant 0 : i32
    %c0_i32_1 = arith.constant 0 : i32
    return %c0_i32, %c0_i32_0 : i32, i32
  }
  func.func @transform_8(%arg0: i32, %arg1: i32) -> (i32, i32, i32, i32) {
    %c0_i32 = arith.constant 0 : i32
    %c0_i32_0 = arith.constant 0 : i32
    %c0_i32_1 = arith.constant 0 : i32
    return %arg0, %arg1, %c0_i32, %c0_i32_0 : i32, i32, i32, i32
  }
}

module attributes {stable_mosaic.version = 11 : i64} {
  func.func @_stage_kernel(%arg0: i32, %arg1: i32, %arg2: memref<1x8x4x64xbf16, #tpu.memory_space<vmem>>, %arg3: memref<1x8x4x64xbf16, #tpu.memory_space<vmem>>, %arg4: memref<1x1x4x64xbf16, #tpu.memory_space<vmem>>, %arg5: memref<1x1x4x64xbf16, #tpu.memory_space<vmem>>, %arg6: memref<64x192xbf16, #tpu.memory_space<vmem>>, %arg7: memref<64x192xbf16, #tpu.memory_space<vmem>>, %arg8: memref<1x32xf32, #tpu.memory_space<vmem>>, %arg9: memref<1x32xf32, #tpu.memory_space<vmem>>, %arg10: memref<1x8x4x32xbf16, #tpu.memory_space<vmem>>) attributes {dimension_semantics = [#tpu.dimension_semantics<parallel>, #tpu.dimension_semantics<parallel>], iteration_bounds = array<i64: 2, 1>, scalar_prefetch = 0 : i64, scratch_operands = 0 : i64, tpu.core_type = #tpu.core_type<tc>, window_params = [{transform_indices = @transform_0, window_bounds = array<i64: 1, 8, 4, 64>}, {transform_indices = @transform_1, window_bounds = array<i64: 1, 8, 4, 64>}, {transform_indices = @transform_2, window_bounds = array<i64: 1, 1, 4, 64>}, {transform_indices = @transform_3, window_bounds = array<i64: 1, 1, 4, 64>}, {pipeline_mode = #tpu.pipeline_mode<synchronous>, transform_indices = @transform_4, window_bounds = array<i64: 64, 192>}, {pipeline_mode = #tpu.pipeline_mode<synchronous>, transform_indices = @transform_5, window_bounds = array<i64: 64, 192>}, {pipeline_mode = #tpu.pipeline_mode<synchronous>, transform_indices = @transform_6, window_bounds = array<i64: 1, 32>}, {pipeline_mode = #tpu.pipeline_mode<synchronous>, transform_indices = @transform_7, window_bounds = array<i64: 1, 32>}, {transform_indices = @transform_8, window_bounds = array<i64: 1, 8, 4, 32>}]} {
    %c0_i32 = arith.constant 0 : i32
    %0 = arith.cmpi eq, %arg1, %c0_i32 : i32
    %cst = arith.constant 0.000000e+00 : f32
    %cst_0 = arith.constant 1.000000e+00 : f32
    %1 = arith.select %0, %cst, %cst_0 : f32
    %cst_1 = arith.constant 0.000000e+00 : f32
    %2 = vector.broadcast %cst_1 : f32 to vector<8x4x32xf32>
    %c0 = arith.constant 0 : index
    %c0_2 = arith.constant 0 : index
    %c0_3 = arith.constant 0 : index
    %c0_4 = arith.constant 0 : index
    %3 = vector.load %arg2[%c0, %c0_2, %c0_3, %c0_4] : memref<1x8x4x64xbf16, #tpu.memory_space<vmem>>, vector<1x8x4x64xbf16>
    %4 = vector.shape_cast %3 : vector<1x8x4x64xbf16> to vector<8x4x64xbf16>
    %5 = vector.shape_cast %4 : vector<8x4x64xbf16> to vector<32x64xbf16>
    %c0_5 = arith.constant 0 : index
    %c0_6 = arith.constant 0 : index
    %c0_7 = arith.constant 0 : index
    %c0_8 = arith.constant 0 : index
    %6 = vector.load %arg4[%c0_5, %c0_6, %c0_7, %c0_8] : memref<1x1x4x64xbf16, #tpu.memory_space<vmem>>, vector<1x1x4x64xbf16>
    %7 = vector.shape_cast %6 : vector<1x1x4x64xbf16> to vector<4x64xbf16>
    %8 = arith.truncf %1 : f32 to bf16
    %9 = vector.broadcast %8 : bf16 to vector<4x64xbf16>
    %10 = arith.mulf %7, %9 : vector<4x64xbf16>
    %c0_9 = arith.constant 0 : index
    %c0_10 = arith.constant 0 : index
    %11 = vector.load %arg6[%c0_9, %c0_10] : memref<64x192xbf16, #tpu.memory_space<vmem>>, vector<64x192xbf16>
    %cst_11 = arith.constant dense<0.000000e+00> : vector<32x192xf32>
    %12 = tpu.matmul %5, %11, %cst_11 {dimension_numbers = #tpu.dot_dimension_numbers<[1], [0], [0], [1], [0, 0, 1, 1], [], []>} : vector<32x64xbf16>, vector<64x192xbf16>, vector<32x192xf32> -> vector<32x192xf32>
    %13 = vector.shape_cast %12 : vector<32x192xf32> to vector<8x4x192xf32>
    %cst_12 = arith.constant dense<0.000000e+00> : vector<4x192xf32>
    %14 = tpu.matmul %10, %11, %cst_12 {dimension_numbers = #tpu.dot_dimension_numbers<[1], [0], [0], [1], [0, 0, 1, 1], [], []>} : vector<4x64xbf16>, vector<64x192xbf16>, vector<4x192xf32> -> vector<4x192xf32>
    %15 = vector.shape_cast %14 : vector<4x192xf32> to vector<1x4x192xf32>
    %16 = vector.extract_strided_slice %13 {offsets = [0, 0, 0], sizes = [7, 4, 192], strides = [1, 1, 1]} : vector<8x4x192xf32> to vector<7x4x192xf32>
    %17 = tpu.concatenate %15, %16 in 0 : vector<1x4x192xf32>, vector<7x4x192xf32> -> vector<8x4x192xf32>
    %18 = vector.extract_strided_slice %13 {offsets = [0, 0, 0], sizes = [8, 4, 32], strides = [1, 1, 1]} : vector<8x4x192xf32> to vector<8x4x32xf32>
    %19 = arith.addf %2, %18 : vector<8x4x32xf32>
    %20 = vector.extract_strided_slice %13 {offsets = [0, 0, 32], sizes = [8, 4, 32], strides = [1, 1, 1]} : vector<8x4x192xf32> to vector<8x4x32xf32>
    %cst_13 = arith.constant 0.000000e+00 : f32
    %21 = vector.broadcast %cst_13 : f32 to vector<8x1x32xf32>
    %22 = vector.extract_strided_slice %20 {offsets = [0, 0, 0], sizes = [8, 3, 32], strides = [1, 1, 1]} : vector<8x4x32xf32> to vector<8x3x32xf32>
    %23 = tpu.concatenate %21, %22 in 1 : vector<8x1x32xf32>, vector<8x3x32xf32> -> vector<8x4x32xf32>
    %24 = arith.addf %19, %23 : vector<8x4x32xf32>
    %25 = vector.extract_strided_slice %13 {offsets = [0, 0, 64], sizes = [8, 4, 32], strides = [1, 1, 1]} : vector<8x4x192xf32> to vector<8x4x32xf32>
    %cst_14 = arith.constant 0.000000e+00 : f32
    %26 = vector.broadcast %cst_14 : f32 to vector<8x2x32xf32>
    %27 = vector.extract_strided_slice %25 {offsets = [0, 0, 0], sizes = [8, 2, 32], strides = [1, 1, 1]} : vector<8x4x32xf32> to vector<8x2x32xf32>
    %28 = tpu.concatenate %26, %27 in 1 : vector<8x2x32xf32>, vector<8x2x32xf32> -> vector<8x4x32xf32>
    %29 = arith.addf %24, %28 : vector<8x4x32xf32>
    %30 = vector.extract_strided_slice %17 {offsets = [0, 0, 96], sizes = [8, 4, 32], strides = [1, 1, 1]} : vector<8x4x192xf32> to vector<8x4x32xf32>
    %31 = arith.addf %29, %30 : vector<8x4x32xf32>
    %32 = vector.extract_strided_slice %17 {offsets = [0, 0, 128], sizes = [8, 4, 32], strides = [1, 1, 1]} : vector<8x4x192xf32> to vector<8x4x32xf32>
    %cst_15 = arith.constant 0.000000e+00 : f32
    %33 = vector.broadcast %cst_15 : f32 to vector<8x1x32xf32>
    %34 = vector.extract_strided_slice %32 {offsets = [0, 0, 0], sizes = [8, 3, 32], strides = [1, 1, 1]} : vector<8x4x32xf32> to vector<8x3x32xf32>
    %35 = tpu.concatenate %33, %34 in 1 : vector<8x1x32xf32>, vector<8x3x32xf32> -> vector<8x4x32xf32>
    %36 = arith.addf %31, %35 : vector<8x4x32xf32>
    %37 = vector.extract_strided_slice %17 {offsets = [0, 0, 160], sizes = [8, 4, 32], strides = [1, 1, 1]} : vector<8x4x192xf32> to vector<8x4x32xf32>
    %cst_16 = arith.constant 0.000000e+00 : f32
    %38 = vector.broadcast %cst_16 : f32 to vector<8x2x32xf32>
    %39 = vector.extract_strided_slice %37 {offsets = [0, 0, 0], sizes = [8, 2, 32], strides = [1, 1, 1]} : vector<8x4x32xf32> to vector<8x2x32xf32>
    %40 = tpu.concatenate %38, %39 in 1 : vector<8x2x32xf32>, vector<8x2x32xf32> -> vector<8x4x32xf32>
    %41 = arith.addf %36, %40 : vector<8x4x32xf32>
    %c0_17 = arith.constant 0 : index
    %c0_18 = arith.constant 0 : index
    %c0_19 = arith.constant 0 : index
    %c0_20 = arith.constant 0 : index
    %42 = vector.load %arg3[%c0_17, %c0_18, %c0_19, %c0_20] : memref<1x8x4x64xbf16, #tpu.memory_space<vmem>>, vector<1x8x4x64xbf16>
    %43 = vector.shape_cast %42 : vector<1x8x4x64xbf16> to vector<8x4x64xbf16>
    %44 = vector.shape_cast %43 : vector<8x4x64xbf16> to vector<32x64xbf16>
    %c0_21 = arith.constant 0 : index
    %c0_22 = arith.constant 0 : index
    %c0_23 = arith.constant 0 : index
    %c0_24 = arith.constant 0 : index
    %45 = vector.load %arg5[%c0_21, %c0_22, %c0_23, %c0_24] : memref<1x1x4x64xbf16, #tpu.memory_space<vmem>>, vector<1x1x4x64xbf16>
    %46 = vector.shape_cast %45 : vector<1x1x4x64xbf16> to vector<4x64xbf16>
    %47 = arith.truncf %1 : f32 to bf16
    %48 = vector.broadcast %47 : bf16 to vector<4x64xbf16>
    %49 = arith.mulf %46, %48 : vector<4x64xbf16>
    %c0_25 = arith.constant 0 : index
    %c0_26 = arith.constant 0 : index
    %50 = vector.load %arg7[%c0_25, %c0_26] : memref<64x192xbf16, #tpu.memory_space<vmem>>, vector<64x192xbf16>
    %cst_27 = arith.constant dense<0.000000e+00> : vector<32x192xf32>
    %51 = tpu.matmul %44, %50, %cst_27 {dimension_numbers = #tpu.dot_dimension_numbers<[1], [0], [0], [1], [0, 0, 1, 1], [], []>} : vector<32x64xbf16>, vector<64x192xbf16>, vector<32x192xf32> -> vector<32x192xf32>
    %52 = vector.shape_cast %51 : vector<32x192xf32> to vector<8x4x192xf32>
    %cst_28 = arith.constant dense<0.000000e+00> : vector<4x192xf32>
    %53 = tpu.matmul %49, %50, %cst_28 {dimension_numbers = #tpu.dot_dimension_numbers<[1], [0], [0], [1], [0, 0, 1, 1], [], []>} : vector<4x64xbf16>, vector<64x192xbf16>, vector<4x192xf32> -> vector<4x192xf32>
    %54 = vector.shape_cast %53 : vector<4x192xf32> to vector<1x4x192xf32>
    %55 = vector.extract_strided_slice %52 {offsets = [0, 0, 0], sizes = [7, 4, 192], strides = [1, 1, 1]} : vector<8x4x192xf32> to vector<7x4x192xf32>
    %56 = tpu.concatenate %54, %55 in 0 : vector<1x4x192xf32>, vector<7x4x192xf32> -> vector<8x4x192xf32>
    %57 = vector.extract_strided_slice %52 {offsets = [0, 0, 0], sizes = [8, 4, 32], strides = [1, 1, 1]} : vector<8x4x192xf32> to vector<8x4x32xf32>
    %58 = arith.addf %41, %57 : vector<8x4x32xf32>
    %59 = vector.extract_strided_slice %52 {offsets = [0, 0, 32], sizes = [8, 4, 32], strides = [1, 1, 1]} : vector<8x4x192xf32> to vector<8x4x32xf32>
    %cst_29 = arith.constant 0.000000e+00 : f32
    %60 = vector.broadcast %cst_29 : f32 to vector<8x1x32xf32>
    %61 = vector.extract_strided_slice %59 {offsets = [0, 0, 0], sizes = [8, 3, 32], strides = [1, 1, 1]} : vector<8x4x32xf32> to vector<8x3x32xf32>
    %62 = tpu.concatenate %60, %61 in 1 : vector<8x1x32xf32>, vector<8x3x32xf32> -> vector<8x4x32xf32>
    %63 = arith.addf %58, %62 : vector<8x4x32xf32>
    %64 = vector.extract_strided_slice %52 {offsets = [0, 0, 64], sizes = [8, 4, 32], strides = [1, 1, 1]} : vector<8x4x192xf32> to vector<8x4x32xf32>
    %cst_30 = arith.constant 0.000000e+00 : f32
    %65 = vector.broadcast %cst_30 : f32 to vector<8x2x32xf32>
    %66 = vector.extract_strided_slice %64 {offsets = [0, 0, 0], sizes = [8, 2, 32], strides = [1, 1, 1]} : vector<8x4x32xf32> to vector<8x2x32xf32>
    %67 = tpu.concatenate %65, %66 in 1 : vector<8x2x32xf32>, vector<8x2x32xf32> -> vector<8x4x32xf32>
    %68 = arith.addf %63, %67 : vector<8x4x32xf32>
    %69 = vector.extract_strided_slice %56 {offsets = [0, 0, 96], sizes = [8, 4, 32], strides = [1, 1, 1]} : vector<8x4x192xf32> to vector<8x4x32xf32>
    %70 = arith.addf %68, %69 : vector<8x4x32xf32>
    %71 = vector.extract_strided_slice %56 {offsets = [0, 0, 128], sizes = [8, 4, 32], strides = [1, 1, 1]} : vector<8x4x192xf32> to vector<8x4x32xf32>
    %cst_31 = arith.constant 0.000000e+00 : f32
    %72 = vector.broadcast %cst_31 : f32 to vector<8x1x32xf32>
    %73 = vector.extract_strided_slice %71 {offsets = [0, 0, 0], sizes = [8, 3, 32], strides = [1, 1, 1]} : vector<8x4x32xf32> to vector<8x3x32xf32>
    %74 = tpu.concatenate %72, %73 in 1 : vector<8x1x32xf32>, vector<8x3x32xf32> -> vector<8x4x32xf32>
    %75 = arith.addf %70, %74 : vector<8x4x32xf32>
    %76 = vector.extract_strided_slice %56 {offsets = [0, 0, 160], sizes = [8, 4, 32], strides = [1, 1, 1]} : vector<8x4x192xf32> to vector<8x4x32xf32>
    %cst_32 = arith.constant 0.000000e+00 : f32
    %77 = vector.broadcast %cst_32 : f32 to vector<8x2x32xf32>
    %78 = vector.extract_strided_slice %76 {offsets = [0, 0, 0], sizes = [8, 2, 32], strides = [1, 1, 1]} : vector<8x4x32xf32> to vector<8x2x32xf32>
    %79 = tpu.concatenate %77, %78 in 1 : vector<8x2x32xf32>, vector<8x2x32xf32> -> vector<8x4x32xf32>
    %80 = arith.addf %75, %79 : vector<8x4x32xf32>
    %c0_33 = arith.constant 0 : index
    %c0_34 = arith.constant 0 : index
    %81 = vector.load %arg8[%c0_33, %c0_34] : memref<1x32xf32, #tpu.memory_space<vmem>>, vector<1x32xf32>
    %82 = vector.shape_cast %81 : vector<1x32xf32> to vector<32xf32>
    %83 = vector.shape_cast %82 : vector<32xf32> to vector<1x1x32xf32>
    %84 = vector.broadcast %83 : vector<1x1x32xf32> to vector<8x4x32xf32>
    %85 = arith.addf %80, %84 : vector<8x4x32xf32>
    %c0_35 = arith.constant 0 : index
    %c0_36 = arith.constant 0 : index
    %86 = vector.load %arg9[%c0_35, %c0_36] : memref<1x32xf32, #tpu.memory_space<vmem>>, vector<1x32xf32>
    %87 = vector.shape_cast %86 : vector<1x32xf32> to vector<32xf32>
    %cst_37 = arith.constant 0.000000e+00 : f32
    %88 = vector.broadcast %cst_37 : f32 to vector<8x4x32xf32>
    %89 = arith.cmpf oge, %85, %88 : vector<8x4x32xf32>
    %90 = vector.shape_cast %87 : vector<32xf32> to vector<1x1x32xf32>
    %91 = vector.broadcast %90 : vector<1x1x32xf32> to vector<8x4x32xf32>
    %92 = arith.mulf %91, %85 : vector<8x4x32xf32>
    %93 = arith.select %89, %85, %92 : vector<8x4x32xi1>, vector<8x4x32xf32>
    %94 = arith.truncf %93 : vector<8x4x32xf32> to vector<8x4x32xbf16>
    %c0_38 = arith.constant 0 : index
    %c0_39 = arith.constant 0 : index
    %c0_40 = arith.constant 0 : index
    %c0_41 = arith.constant 0 : index
    %95 = vector.load %arg10[%c0_38, %c0_39, %c0_40, %c0_41] : memref<1x8x4x32xbf16, #tpu.memory_space<vmem>>, vector<1x8x4x32xbf16>
    %96 = vector.shape_cast %95 : vector<1x8x4x32xbf16> to vector<8x4x32xbf16>
    %97 = vector.shape_cast %94 : vector<8x4x32xbf16> to vector<1x8x4x32xbf16>
    tpu.vector_store %arg10[%c0_38, %c0_39, %c0_40, %c0_41], %97 {strides = array<i32>} : memref<1x8x4x32xbf16, #tpu.memory_space<vmem>>, vector<1x8x4x32xbf16>,
    return
  }
  func.func @transform_0(%arg0: i32, %arg1: i32) -> (i32, i32, i32, i32) {
    %c0_i32 = arith.constant 0 : i32
    %c0_i32_0 = arith.constant 0 : i32
    %c0_i32_1 = arith.constant 0 : i32
    return %arg0, %arg1, %c0_i32, %c0_i32_0 : i32, i32, i32, i32
  }
  func.func @transform_1(%arg0: i32, %arg1: i32) -> (i32, i32, i32, i32) {
    %c0_i32 = arith.constant 0 : i32
    %c0_i32_0 = arith.constant 0 : i32
    %c0_i32_1 = arith.constant 0 : i32
    return %arg0, %arg1, %c0_i32, %c0_i32_0 : i32, i32, i32, i32
  }
  func.func @transform_2(%arg0: i32, %arg1: i32) -> (i32, i32, i32, i32) {
    %c8_i32 = arith.constant 8 : i32
    %0 = arith.muli %arg1, %c8_i32 : i32
    %c1_i32 = arith.constant 1 : i32
    %1 = arith.subi %0, %c1_i32 : i32
    %c0_i32 = arith.constant 0 : i32
    %2 = arith.maxsi %1, %c0_i32 : i32
    %c0_i32_0 = arith.constant 0 : i32
    %c0_i32_1 = arith.constant 0 : i32
    %c0_i32_2 = arith.constant 0 : i32
    return %arg0, %2, %c0_i32_0, %c0_i32_1 : i32, i32, i32, i32
  }
  func.func @transform_3(%arg0: i32, %arg1: i32) -> (i32, i32, i32, i32) {
    %c8_i32 = arith.constant 8 : i32
    %0 = arith.muli %arg1, %c8_i32 : i32
    %c1_i32 = arith.constant 1 : i32
    %1 = arith.subi %0, %c1_i32 : i32
    %c0_i32 = arith.constant 0 : i32
    %2 = arith.maxsi %1, %c0_i32 : i32
    %c0_i32_0 = arith.constant 0 : i32
    %c0_i32_1 = arith.constant 0 : i32
    %c0_i32_2 = arith.constant 0 : i32
    return %arg0, %2, %c0_i32_0, %c0_i32_1 : i32, i32, i32, i32
  }
  func.func @transform_4(%arg0: i32, %arg1: i32) -> (i32, i32) {
    %c0_i32 = arith.constant 0 : i32
    %c0_i32_0 = arith.constant 0 : i32
    %c0_i32_1 = arith.constant 0 : i32
    return %c0_i32, %c0_i32_0 : i32, i32
  }
  func.func @transform_5(%arg0: i32, %arg1: i32) -> (i32, i32) {
    %c0_i32 = arith.constant 0 : i32
    %c0_i32_0 = arith.constant 0 : i32
    %c0_i32_1 = arith.constant 0 : i32
    return %c0_i32, %c0_i32_0 : i32, i32
  }
  func.func @transform_6(%arg0: i32, %arg1: i32) -> (i32, i32) {
    %c0_i32 = arith.constant 0 : i32
    %c0_i32_0 = arith.constant 0 : i32
    %c0_i32_1 = arith.constant 0 : i32
    return %c0_i32, %c0_i32_0 : i32, i32
  }
  func.func @transform_7(%arg0: i32, %arg1: i32) -> (i32, i32) {
    %c0_i32 = arith.constant 0 : i32
    %c0_i32_0 = arith.constant 0 : i32
    %c0_i32_1 = arith.constant 0 : i32
    return %c0_i32, %c0_i32_0 : i32, i32
  }
  func.func @transform_8(%arg0: i32, %arg1: i32) -> (i32, i32, i32, i32) {
    %c0_i32 = arith.constant 0 : i32
    %c0_i32_0 = arith.constant 0 : i32
    %c0_i32_1 = arith.constant 0 : i32
    return %arg0, %arg1, %c0_i32, %c0_i32_0 : i32, i32, i32, i32
  }
}

module attributes {stable_mosaic.version = 11 : i64} {
  func.func @_stage_kernel(%arg0: i32, %arg1: i32, %arg2: memref<1x8x4x32xbf16, #tpu.memory_space<vmem>>, %arg3: memref<1x8x4x32xbf16, #tpu.memory_space<vmem>>, %arg4: memref<1x1x4x32xbf16, #tpu.memory_space<vmem>>, %arg5: memref<1x1x4x32xbf16, #tpu.memory_space<vmem>>, %arg6: memref<32x192xbf16, #tpu.memory_space<vmem>>, %arg7: memref<32x192xbf16, #tpu.memory_space<vmem>>, %arg8: memref<1x32xf32, #tpu.memory_space<vmem>>, %arg9: memref<1x32xf32, #tpu.memory_space<vmem>>, %arg10: memref<1x8x4x32xbf16, #tpu.memory_space<vmem>>) attributes {dimension_semantics = [#tpu.dimension_semantics<parallel>, #tpu.dimension_semantics<parallel>], iteration_bounds = array<i64: 2, 1>, scalar_prefetch = 0 : i64, scratch_operands = 0 : i64, tpu.core_type = #tpu.core_type<tc>, window_params = [{transform_indices = @transform_0, window_bounds = array<i64: 1, 8, 4, 32>}, {transform_indices = @transform_1, window_bounds = array<i64: 1, 8, 4, 32>}, {transform_indices = @transform_2, window_bounds = array<i64: 1, 1, 4, 32>}, {transform_indices = @transform_3, window_bounds = array<i64: 1, 1, 4, 32>}, {pipeline_mode = #tpu.pipeline_mode<synchronous>, transform_indices = @transform_4, window_bounds = array<i64: 32, 192>}, {pipeline_mode = #tpu.pipeline_mode<synchronous>, transform_indices = @transform_5, window_bounds = array<i64: 32, 192>}, {pipeline_mode = #tpu.pipeline_mode<synchronous>, transform_indices = @transform_6, window_bounds = array<i64: 1, 32>}, {pipeline_mode = #tpu.pipeline_mode<synchronous>, transform_indices = @transform_7, window_bounds = array<i64: 1, 32>}, {transform_indices = @transform_8, window_bounds = array<i64: 1, 8, 4, 32>}]} {
    %c0_i32 = arith.constant 0 : i32
    %0 = arith.cmpi eq, %arg1, %c0_i32 : i32
    %cst = arith.constant 0.000000e+00 : f32
    %cst_0 = arith.constant 1.000000e+00 : f32
    %1 = arith.select %0, %cst, %cst_0 : f32
    %cst_1 = arith.constant 0.000000e+00 : f32
    %2 = vector.broadcast %cst_1 : f32 to vector<8x4x32xf32>
    %c0 = arith.constant 0 : index
    %c0_2 = arith.constant 0 : index
    %c0_3 = arith.constant 0 : index
    %c0_4 = arith.constant 0 : index
    %3 = vector.load %arg2[%c0, %c0_2, %c0_3, %c0_4] : memref<1x8x4x32xbf16, #tpu.memory_space<vmem>>, vector<1x8x4x32xbf16>
    %4 = vector.shape_cast %3 : vector<1x8x4x32xbf16> to vector<8x4x32xbf16>
    %5 = vector.shape_cast %4 : vector<8x4x32xbf16> to vector<32x32xbf16>
    %c0_5 = arith.constant 0 : index
    %c0_6 = arith.constant 0 : index
    %c0_7 = arith.constant 0 : index
    %c0_8 = arith.constant 0 : index
    %6 = vector.load %arg4[%c0_5, %c0_6, %c0_7, %c0_8] : memref<1x1x4x32xbf16, #tpu.memory_space<vmem>>, vector<1x1x4x32xbf16>
    %7 = vector.shape_cast %6 : vector<1x1x4x32xbf16> to vector<4x32xbf16>
    %8 = arith.truncf %1 : f32 to bf16
    %9 = vector.broadcast %8 : bf16 to vector<4x32xbf16>
    %10 = arith.mulf %7, %9 : vector<4x32xbf16>
    %c0_9 = arith.constant 0 : index
    %c0_10 = arith.constant 0 : index
    %11 = vector.load %arg6[%c0_9, %c0_10] : memref<32x192xbf16, #tpu.memory_space<vmem>>, vector<32x192xbf16>
    %cst_11 = arith.constant dense<0.000000e+00> : vector<32x192xf32>
    %12 = tpu.matmul %5, %11, %cst_11 {dimension_numbers = #tpu.dot_dimension_numbers<[1], [0], [0], [1], [0, 0, 1, 1], [], []>} : vector<32x32xbf16>, vector<32x192xbf16>, vector<32x192xf32> -> vector<32x192xf32>
    %13 = vector.shape_cast %12 : vector<32x192xf32> to vector<8x4x192xf32>
    %cst_12 = arith.constant dense<0.000000e+00> : vector<4x192xf32>
    %14 = tpu.matmul %10, %11, %cst_12 {dimension_numbers = #tpu.dot_dimension_numbers<[1], [0], [0], [1], [0, 0, 1, 1], [], []>} : vector<4x32xbf16>, vector<32x192xbf16>, vector<4x192xf32> -> vector<4x192xf32>
    %15 = vector.shape_cast %14 : vector<4x192xf32> to vector<1x4x192xf32>
    %16 = vector.extract_strided_slice %13 {offsets = [0, 0, 0], sizes = [7, 4, 192], strides = [1, 1, 1]} : vector<8x4x192xf32> to vector<7x4x192xf32>
    %17 = tpu.concatenate %15, %16 in 0 : vector<1x4x192xf32>, vector<7x4x192xf32> -> vector<8x4x192xf32>
    %18 = vector.extract_strided_slice %13 {offsets = [0, 0, 0], sizes = [8, 4, 32], strides = [1, 1, 1]} : vector<8x4x192xf32> to vector<8x4x32xf32>
    %19 = arith.addf %2, %18 : vector<8x4x32xf32>
    %20 = vector.extract_strided_slice %13 {offsets = [0, 0, 32], sizes = [8, 4, 32], strides = [1, 1, 1]} : vector<8x4x192xf32> to vector<8x4x32xf32>
    %cst_13 = arith.constant 0.000000e+00 : f32
    %21 = vector.broadcast %cst_13 : f32 to vector<8x1x32xf32>
    %22 = vector.extract_strided_slice %20 {offsets = [0, 0, 0], sizes = [8, 3, 32], strides = [1, 1, 1]} : vector<8x4x32xf32> to vector<8x3x32xf32>
    %23 = tpu.concatenate %21, %22 in 1 : vector<8x1x32xf32>, vector<8x3x32xf32> -> vector<8x4x32xf32>
    %24 = arith.addf %19, %23 : vector<8x4x32xf32>
    %25 = vector.extract_strided_slice %13 {offsets = [0, 0, 64], sizes = [8, 4, 32], strides = [1, 1, 1]} : vector<8x4x192xf32> to vector<8x4x32xf32>
    %cst_14 = arith.constant 0.000000e+00 : f32
    %26 = vector.broadcast %cst_14 : f32 to vector<8x2x32xf32>
    %27 = vector.extract_strided_slice %25 {offsets = [0, 0, 0], sizes = [8, 2, 32], strides = [1, 1, 1]} : vector<8x4x32xf32> to vector<8x2x32xf32>
    %28 = tpu.concatenate %26, %27 in 1 : vector<8x2x32xf32>, vector<8x2x32xf32> -> vector<8x4x32xf32>
    %29 = arith.addf %24, %28 : vector<8x4x32xf32>
    %30 = vector.extract_strided_slice %17 {offsets = [0, 0, 96], sizes = [8, 4, 32], strides = [1, 1, 1]} : vector<8x4x192xf32> to vector<8x4x32xf32>
    %31 = arith.addf %29, %30 : vector<8x4x32xf32>
    %32 = vector.extract_strided_slice %17 {offsets = [0, 0, 128], sizes = [8, 4, 32], strides = [1, 1, 1]} : vector<8x4x192xf32> to vector<8x4x32xf32>
    %cst_15 = arith.constant 0.000000e+00 : f32
    %33 = vector.broadcast %cst_15 : f32 to vector<8x1x32xf32>
    %34 = vector.extract_strided_slice %32 {offsets = [0, 0, 0], sizes = [8, 3, 32], strides = [1, 1, 1]} : vector<8x4x32xf32> to vector<8x3x32xf32>
    %35 = tpu.concatenate %33, %34 in 1 : vector<8x1x32xf32>, vector<8x3x32xf32> -> vector<8x4x32xf32>
    %36 = arith.addf %31, %35 : vector<8x4x32xf32>
    %37 = vector.extract_strided_slice %17 {offsets = [0, 0, 160], sizes = [8, 4, 32], strides = [1, 1, 1]} : vector<8x4x192xf32> to vector<8x4x32xf32>
    %cst_16 = arith.constant 0.000000e+00 : f32
    %38 = vector.broadcast %cst_16 : f32 to vector<8x2x32xf32>
    %39 = vector.extract_strided_slice %37 {offsets = [0, 0, 0], sizes = [8, 2, 32], strides = [1, 1, 1]} : vector<8x4x32xf32> to vector<8x2x32xf32>
    %40 = tpu.concatenate %38, %39 in 1 : vector<8x2x32xf32>, vector<8x2x32xf32> -> vector<8x4x32xf32>
    %41 = arith.addf %36, %40 : vector<8x4x32xf32>
    %c0_17 = arith.constant 0 : index
    %c0_18 = arith.constant 0 : index
    %c0_19 = arith.constant 0 : index
    %c0_20 = arith.constant 0 : index
    %42 = vector.load %arg3[%c0_17, %c0_18, %c0_19, %c0_20] : memref<1x8x4x32xbf16, #tpu.memory_space<vmem>>, vector<1x8x4x32xbf16>
    %43 = vector.shape_cast %42 : vector<1x8x4x32xbf16> to vector<8x4x32xbf16>
    %44 = vector.shape_cast %43 : vector<8x4x32xbf16> to vector<32x32xbf16>
    %c0_21 = arith.constant 0 : index
    %c0_22 = arith.constant 0 : index
    %c0_23 = arith.constant 0 : index
    %c0_24 = arith.constant 0 : index
    %45 = vector.load %arg5[%c0_21, %c0_22, %c0_23, %c0_24] : memref<1x1x4x32xbf16, #tpu.memory_space<vmem>>, vector<1x1x4x32xbf16>
    %46 = vector.shape_cast %45 : vector<1x1x4x32xbf16> to vector<4x32xbf16>
    %47 = arith.truncf %1 : f32 to bf16
    %48 = vector.broadcast %47 : bf16 to vector<4x32xbf16>
    %49 = arith.mulf %46, %48 : vector<4x32xbf16>
    %c0_25 = arith.constant 0 : index
    %c0_26 = arith.constant 0 : index
    %50 = vector.load %arg7[%c0_25, %c0_26] : memref<32x192xbf16, #tpu.memory_space<vmem>>, vector<32x192xbf16>
    %cst_27 = arith.constant dense<0.000000e+00> : vector<32x192xf32>
    %51 = tpu.matmul %44, %50, %cst_27 {dimension_numbers = #tpu.dot_dimension_numbers<[1], [0], [0], [1], [0, 0, 1, 1], [], []>} : vector<32x32xbf16>, vector<32x192xbf16>, vector<32x192xf32> -> vector<32x192xf32>
    %52 = vector.shape_cast %51 : vector<32x192xf32> to vector<8x4x192xf32>
    %cst_28 = arith.constant dense<0.000000e+00> : vector<4x192xf32>
    %53 = tpu.matmul %49, %50, %cst_28 {dimension_numbers = #tpu.dot_dimension_numbers<[1], [0], [0], [1], [0, 0, 1, 1], [], []>} : vector<4x32xbf16>, vector<32x192xbf16>, vector<4x192xf32> -> vector<4x192xf32>
    %54 = vector.shape_cast %53 : vector<4x192xf32> to vector<1x4x192xf32>
    %55 = vector.extract_strided_slice %52 {offsets = [0, 0, 0], sizes = [7, 4, 192], strides = [1, 1, 1]} : vector<8x4x192xf32> to vector<7x4x192xf32>
    %56 = tpu.concatenate %54, %55 in 0 : vector<1x4x192xf32>, vector<7x4x192xf32> -> vector<8x4x192xf32>
    %57 = vector.extract_strided_slice %52 {offsets = [0, 0, 0], sizes = [8, 4, 32], strides = [1, 1, 1]} : vector<8x4x192xf32> to vector<8x4x32xf32>
    %58 = arith.addf %41, %57 : vector<8x4x32xf32>
    %59 = vector.extract_strided_slice %52 {offsets = [0, 0, 32], sizes = [8, 4, 32], strides = [1, 1, 1]} : vector<8x4x192xf32> to vector<8x4x32xf32>
    %cst_29 = arith.constant 0.000000e+00 : f32
    %60 = vector.broadcast %cst_29 : f32 to vector<8x1x32xf32>
    %61 = vector.extract_strided_slice %59 {offsets = [0, 0, 0], sizes = [8, 3, 32], strides = [1, 1, 1]} : vector<8x4x32xf32> to vector<8x3x32xf32>
    %62 = tpu.concatenate %60, %61 in 1 : vector<8x1x32xf32>, vector<8x3x32xf32> -> vector<8x4x32xf32>
    %63 = arith.addf %58, %62 : vector<8x4x32xf32>
    %64 = vector.extract_strided_slice %52 {offsets = [0, 0, 64], sizes = [8, 4, 32], strides = [1, 1, 1]} : vector<8x4x192xf32> to vector<8x4x32xf32>
    %cst_30 = arith.constant 0.000000e+00 : f32
    %65 = vector.broadcast %cst_30 : f32 to vector<8x2x32xf32>
    %66 = vector.extract_strided_slice %64 {offsets = [0, 0, 0], sizes = [8, 2, 32], strides = [1, 1, 1]} : vector<8x4x32xf32> to vector<8x2x32xf32>
    %67 = tpu.concatenate %65, %66 in 1 : vector<8x2x32xf32>, vector<8x2x32xf32> -> vector<8x4x32xf32>
    %68 = arith.addf %63, %67 : vector<8x4x32xf32>
    %69 = vector.extract_strided_slice %56 {offsets = [0, 0, 96], sizes = [8, 4, 32], strides = [1, 1, 1]} : vector<8x4x192xf32> to vector<8x4x32xf32>
    %70 = arith.addf %68, %69 : vector<8x4x32xf32>
    %71 = vector.extract_strided_slice %56 {offsets = [0, 0, 128], sizes = [8, 4, 32], strides = [1, 1, 1]} : vector<8x4x192xf32> to vector<8x4x32xf32>
    %cst_31 = arith.constant 0.000000e+00 : f32
    %72 = vector.broadcast %cst_31 : f32 to vector<8x1x32xf32>
    %73 = vector.extract_strided_slice %71 {offsets = [0, 0, 0], sizes = [8, 3, 32], strides = [1, 1, 1]} : vector<8x4x32xf32> to vector<8x3x32xf32>
    %74 = tpu.concatenate %72, %73 in 1 : vector<8x1x32xf32>, vector<8x3x32xf32> -> vector<8x4x32xf32>
    %75 = arith.addf %70, %74 : vector<8x4x32xf32>
    %76 = vector.extract_strided_slice %56 {offsets = [0, 0, 160], sizes = [8, 4, 32], strides = [1, 1, 1]} : vector<8x4x192xf32> to vector<8x4x32xf32>
    %cst_32 = arith.constant 0.000000e+00 : f32
    %77 = vector.broadcast %cst_32 : f32 to vector<8x2x32xf32>
    %78 = vector.extract_strided_slice %76 {offsets = [0, 0, 0], sizes = [8, 2, 32], strides = [1, 1, 1]} : vector<8x4x32xf32> to vector<8x2x32xf32>
    %79 = tpu.concatenate %77, %78 in 1 : vector<8x2x32xf32>, vector<8x2x32xf32> -> vector<8x4x32xf32>
    %80 = arith.addf %75, %79 : vector<8x4x32xf32>
    %c0_33 = arith.constant 0 : index
    %c0_34 = arith.constant 0 : index
    %81 = vector.load %arg8[%c0_33, %c0_34] : memref<1x32xf32, #tpu.memory_space<vmem>>, vector<1x32xf32>
    %82 = vector.shape_cast %81 : vector<1x32xf32> to vector<32xf32>
    %83 = vector.shape_cast %82 : vector<32xf32> to vector<1x1x32xf32>
    %84 = vector.broadcast %83 : vector<1x1x32xf32> to vector<8x4x32xf32>
    %85 = arith.addf %80, %84 : vector<8x4x32xf32>
    %c0_35 = arith.constant 0 : index
    %c0_36 = arith.constant 0 : index
    %86 = vector.load %arg9[%c0_35, %c0_36] : memref<1x32xf32, #tpu.memory_space<vmem>>, vector<1x32xf32>
    %87 = vector.shape_cast %86 : vector<1x32xf32> to vector<32xf32>
    %cst_37 = arith.constant 0.000000e+00 : f32
    %88 = vector.broadcast %cst_37 : f32 to vector<8x4x32xf32>
    %89 = arith.cmpf oge, %85, %88 : vector<8x4x32xf32>
    %90 = vector.shape_cast %87 : vector<32xf32> to vector<1x1x32xf32>
    %91 = vector.broadcast %90 : vector<1x1x32xf32> to vector<8x4x32xf32>
    %92 = arith.mulf %91, %85 : vector<8x4x32xf32>
    %93 = arith.select %89, %85, %92 : vector<8x4x32xi1>, vector<8x4x32xf32>
    %94 = arith.truncf %93 : vector<8x4x32xf32> to vector<8x4x32xbf16>
    %c0_38 = arith.constant 0 : index
    %c0_39 = arith.constant 0 : index
    %c0_40 = arith.constant 0 : index
    %c0_41 = arith.constant 0 : index
    %95 = vector.load %arg10[%c0_38, %c0_39, %c0_40, %c0_41] : memref<1x8x4x32xbf16, #tpu.memory_space<vmem>>, vector<1x8x4x32xbf16>
    %96 = vector.shape_cast %95 : vector<1x8x4x32xbf16> to vector<8x4x32xbf16>
    %97 = vector.shape_cast %94 : vector<8x4x32xbf16> to vector<1x8x4x32xbf16>
    tpu.vector_store %arg10[%c0_38, %c0_39, %c0_40, %c0_41], %97 {strides = array<i32>} : memref<1x8x4x32xbf16, #tpu.memory_space<vmem>>, vector<1x8x4x32xbf16>,
    return
  }
  func.func @transform_0(%arg0: i32, %arg1: i32) -> (i32, i32, i32, i32) {
    %c0_i32 = arith.constant 0 : i32
    %c0_i32_0 = arith.constant 0 : i32
    %c0_i32_1 = arith.constant 0 : i32
    return %arg0, %arg1, %c0_i32, %c0_i32_0 : i32, i32, i32, i32
  }
  func.func @transform_1(%arg0: i32, %arg1: i32) -> (i32, i32, i32, i32) {
    %c0_i32 = arith.constant 0 : i32
    %c0_i32_0 = arith.constant 0 : i32
    %c0_i32_1 = arith.constant 0 : i32
    return %arg0, %arg1, %c0_i32, %c0_i32_0 : i32, i32, i32, i32
  }
  func.func @transform_2(%arg0: i32, %arg1: i32) -> (i32, i32, i32, i32) {
    %c8_i32 = arith.constant 8 : i32
    %0 = arith.muli %arg1, %c8_i32 : i32
    %c1_i32 = arith.constant 1 : i32
    %1 = arith.subi %0, %c1_i32 : i32
    %c0_i32 = arith.constant 0 : i32
    %2 = arith.maxsi %1, %c0_i32 : i32
    %c0_i32_0 = arith.constant 0 : i32
    %c0_i32_1 = arith.constant 0 : i32
    %c0_i32_2 = arith.constant 0 : i32
    return %arg0, %2, %c0_i32_0, %c0_i32_1 : i32, i32, i32, i32
  }
  func.func @transform_3(%arg0: i32, %arg1: i32) -> (i32, i32, i32, i32) {
    %c8_i32 = arith.constant 8 : i32
    %0 = arith.muli %arg1, %c8_i32 : i32
    %c1_i32 = arith.constant 1 : i32
    %1 = arith.subi %0, %c1_i32 : i32
    %c0_i32 = arith.constant 0 : i32
    %2 = arith.maxsi %1, %c0_i32 : i32
    %c0_i32_0 = arith.constant 0 : i32
    %c0_i32_1 = arith.constant 0 : i32
    %c0_i32_2 = arith.constant 0 : i32
    return %arg0, %2, %c0_i32_0, %c0_i32_1 : i32, i32, i32, i32
  }
  func.func @transform_4(%arg0: i32, %arg1: i32) -> (i32, i32) {
    %c0_i32 = arith.constant 0 : i32
    %c0_i32_0 = arith.constant 0 : i32
    %c0_i32_1 = arith.constant 0 : i32
    return %c0_i32, %c0_i32_0 : i32, i32
  }
  func.func @transform_5(%arg0: i32, %arg1: i32) -> (i32, i32) {
    %c0_i32 = arith.constant 0 : i32
    %c0_i32_0 = arith.constant 0 : i32
    %c0_i32_1 = arith.constant 0 : i32
    return %c0_i32, %c0_i32_0 : i32, i32
  }
  func.func @transform_6(%arg0: i32, %arg1: i32) -> (i32, i32) {
    %c0_i32 = arith.constant 0 : i32
    %c0_i32_0 = arith.constant 0 : i32
    %c0_i32_1 = arith.constant 0 : i32
    return %c0_i32, %c0_i32_0 : i32, i32
  }
  func.func @transform_7(%arg0: i32, %arg1: i32) -> (i32, i32) {
    %c0_i32 = arith.constant 0 : i32
    %c0_i32_0 = arith.constant 0 : i32
    %c0_i32_1 = arith.constant 0 : i32
    return %c0_i32, %c0_i32_0 : i32, i32
  }
  func.func @transform_8(%arg0: i32, %arg1: i32) -> (i32, i32, i32, i32) {
    %c0_i32 = arith.constant 0 : i32
    %c0_i32_0 = arith.constant 0 : i32
    %c0_i32_1 = arith.constant 0 : i32
    return %arg0, %arg1, %c0_i32, %c0_i32_0 : i32, i32, i32, i32
  }
}

module attributes {stable_mosaic.version = 11 : i64} {
  func.func @_stage_kernel(%arg0: i32, %arg1: i32, %arg2: memref<1x8x4x32xbf16, #tpu.memory_space<vmem>>, %arg3: memref<1x8x4x32xbf16, #tpu.memory_space<vmem>>, %arg4: memref<1x1x4x32xbf16, #tpu.memory_space<vmem>>, %arg5: memref<1x1x4x32xbf16, #tpu.memory_space<vmem>>, %arg6: memref<32x192xbf16, #tpu.memory_space<vmem>>, %arg7: memref<32x192xbf16, #tpu.memory_space<vmem>>, %arg8: memref<1x64xf32, #tpu.memory_space<vmem>>, %arg9: memref<1x64xf32, #tpu.memory_space<vmem>>, %arg10: memref<1x8x4x64xbf16, #tpu.memory_space<vmem>>) attributes {dimension_semantics = [#tpu.dimension_semantics<parallel>, #tpu.dimension_semantics<parallel>], iteration_bounds = array<i64: 2, 1>, scalar_prefetch = 0 : i64, scratch_operands = 0 : i64, tpu.core_type = #tpu.core_type<tc>, window_params = [{transform_indices = @transform_0, window_bounds = array<i64: 1, 8, 4, 32>}, {transform_indices = @transform_1, window_bounds = array<i64: 1, 8, 4, 32>}, {transform_indices = @transform_2, window_bounds = array<i64: 1, 1, 4, 32>}, {transform_indices = @transform_3, window_bounds = array<i64: 1, 1, 4, 32>}, {pipeline_mode = #tpu.pipeline_mode<synchronous>, transform_indices = @transform_4, window_bounds = array<i64: 32, 192>}, {pipeline_mode = #tpu.pipeline_mode<synchronous>, transform_indices = @transform_5, window_bounds = array<i64: 32, 192>}, {pipeline_mode = #tpu.pipeline_mode<synchronous>, transform_indices = @transform_6, window_bounds = array<i64: 1, 64>}, {pipeline_mode = #tpu.pipeline_mode<synchronous>, transform_indices = @transform_7, window_bounds = array<i64: 1, 64>}, {transform_indices = @transform_8, window_bounds = array<i64: 1, 8, 4, 64>}]} {
    %c0_i32 = arith.constant 0 : i32
    %0 = arith.cmpi eq, %arg1, %c0_i32 : i32
    %cst = arith.constant 0.000000e+00 : f32
    %cst_0 = arith.constant 1.000000e+00 : f32
    %1 = arith.select %0, %cst, %cst_0 : f32
    %cst_1 = arith.constant 0.000000e+00 : f32
    %2 = vector.broadcast %cst_1 : f32 to vector<8x4x32xf32>
    %cst_2 = arith.constant 0.000000e+00 : f32
    %3 = vector.broadcast %cst_2 : f32 to vector<8x4x32xf32>
    %c0 = arith.constant 0 : index
    %c0_3 = arith.constant 0 : index
    %c0_4 = arith.constant 0 : index
    %c0_5 = arith.constant 0 : index
    %4 = vector.load %arg2[%c0, %c0_3, %c0_4, %c0_5] : memref<1x8x4x32xbf16, #tpu.memory_space<vmem>>, vector<1x8x4x32xbf16>
    %5 = vector.shape_cast %4 : vector<1x8x4x32xbf16> to vector<8x4x32xbf16>
    %6 = vector.shape_cast %5 : vector<8x4x32xbf16> to vector<32x32xbf16>
    %c0_6 = arith.constant 0 : index
    %c0_7 = arith.constant 0 : index
    %c0_8 = arith.constant 0 : index
    %c0_9 = arith.constant 0 : index
    %7 = vector.load %arg4[%c0_6, %c0_7, %c0_8, %c0_9] : memref<1x1x4x32xbf16, #tpu.memory_space<vmem>>, vector<1x1x4x32xbf16>
    %8 = vector.shape_cast %7 : vector<1x1x4x32xbf16> to vector<4x32xbf16>
    %9 = arith.truncf %1 : f32 to bf16
    %10 = vector.broadcast %9 : bf16 to vector<4x32xbf16>
    %11 = arith.mulf %8, %10 : vector<4x32xbf16>
    %c0_10 = arith.constant 0 : index
    %c0_11 = arith.constant 0 : index
    %12 = vector.load %arg6[%c0_10, %c0_11] : memref<32x192xbf16, #tpu.memory_space<vmem>>, vector<32x192xbf16>
    %cst_12 = arith.constant dense<0.000000e+00> : vector<32x192xf32>
    %13 = tpu.matmul %6, %12, %cst_12 {dimension_numbers = #tpu.dot_dimension_numbers<[1], [0], [0], [1], [0, 0, 1, 1], [], []>} : vector<32x32xbf16>, vector<32x192xbf16>, vector<32x192xf32> -> vector<32x192xf32>
    %14 = vector.shape_cast %13 : vector<32x192xf32> to vector<8x4x192xf32>
    %cst_13 = arith.constant dense<0.000000e+00> : vector<4x192xf32>
    %15 = tpu.matmul %11, %12, %cst_13 {dimension_numbers = #tpu.dot_dimension_numbers<[1], [0], [0], [1], [0, 0, 1, 1], [], []>} : vector<4x32xbf16>, vector<32x192xbf16>, vector<4x192xf32> -> vector<4x192xf32>
    %16 = vector.shape_cast %15 : vector<4x192xf32> to vector<1x4x192xf32>
    %17 = vector.extract_strided_slice %14 {offsets = [0, 0, 0], sizes = [7, 4, 192], strides = [1, 1, 1]} : vector<8x4x192xf32> to vector<7x4x192xf32>
    %18 = tpu.concatenate %16, %17 in 0 : vector<1x4x192xf32>, vector<7x4x192xf32> -> vector<8x4x192xf32>
    %19 = vector.extract_strided_slice %14 {offsets = [0, 0, 0], sizes = [8, 4, 32], strides = [1, 1, 1]} : vector<8x4x192xf32> to vector<8x4x32xf32>
    %20 = arith.addf %2, %19 : vector<8x4x32xf32>
    %21 = vector.extract_strided_slice %14 {offsets = [0, 0, 32], sizes = [8, 4, 32], strides = [1, 1, 1]} : vector<8x4x192xf32> to vector<8x4x32xf32>
    %22 = arith.addf %3, %21 : vector<8x4x32xf32>
    %23 = vector.extract_strided_slice %14 {offsets = [0, 0, 64], sizes = [8, 4, 32], strides = [1, 1, 1]} : vector<8x4x192xf32> to vector<8x4x32xf32>
    %cst_14 = arith.constant 0.000000e+00 : f32
    %24 = vector.broadcast %cst_14 : f32 to vector<8x1x32xf32>
    %25 = vector.extract_strided_slice %23 {offsets = [0, 0, 0], sizes = [8, 3, 32], strides = [1, 1, 1]} : vector<8x4x32xf32> to vector<8x3x32xf32>
    %26 = tpu.concatenate %24, %25 in 1 : vector<8x1x32xf32>, vector<8x3x32xf32> -> vector<8x4x32xf32>
    %27 = arith.addf %20, %26 : vector<8x4x32xf32>
    %28 = vector.extract_strided_slice %18 {offsets = [0, 0, 96], sizes = [8, 4, 32], strides = [1, 1, 1]} : vector<8x4x192xf32> to vector<8x4x32xf32>
    %29 = arith.addf %27, %28 : vector<8x4x32xf32>
    %30 = vector.extract_strided_slice %18 {offsets = [0, 0, 128], sizes = [8, 4, 32], strides = [1, 1, 1]} : vector<8x4x192xf32> to vector<8x4x32xf32>
    %31 = arith.addf %22, %30 : vector<8x4x32xf32>
    %32 = vector.extract_strided_slice %18 {offsets = [0, 0, 160], sizes = [8, 4, 32], strides = [1, 1, 1]} : vector<8x4x192xf32> to vector<8x4x32xf32>
    %cst_15 = arith.constant 0.000000e+00 : f32
    %33 = vector.broadcast %cst_15 : f32 to vector<8x1x32xf32>
    %34 = vector.extract_strided_slice %32 {offsets = [0, 0, 0], sizes = [8, 3, 32], strides = [1, 1, 1]} : vector<8x4x32xf32> to vector<8x3x32xf32>
    %35 = tpu.concatenate %33, %34 in 1 : vector<8x1x32xf32>, vector<8x3x32xf32> -> vector<8x4x32xf32>
    %36 = arith.addf %29, %35 : vector<8x4x32xf32>
    %c0_16 = arith.constant 0 : index
    %c0_17 = arith.constant 0 : index
    %c0_18 = arith.constant 0 : index
    %c0_19 = arith.constant 0 : index
    %37 = vector.load %arg3[%c0_16, %c0_17, %c0_18, %c0_19] : memref<1x8x4x32xbf16, #tpu.memory_space<vmem>>, vector<1x8x4x32xbf16>
    %38 = vector.shape_cast %37 : vector<1x8x4x32xbf16> to vector<8x4x32xbf16>
    %39 = vector.shape_cast %38 : vector<8x4x32xbf16> to vector<32x32xbf16>
    %c0_20 = arith.constant 0 : index
    %c0_21 = arith.constant 0 : index
    %c0_22 = arith.constant 0 : index
    %c0_23 = arith.constant 0 : index
    %40 = vector.load %arg5[%c0_20, %c0_21, %c0_22, %c0_23] : memref<1x1x4x32xbf16, #tpu.memory_space<vmem>>, vector<1x1x4x32xbf16>
    %41 = vector.shape_cast %40 : vector<1x1x4x32xbf16> to vector<4x32xbf16>
    %42 = arith.truncf %1 : f32 to bf16
    %43 = vector.broadcast %42 : bf16 to vector<4x32xbf16>
    %44 = arith.mulf %41, %43 : vector<4x32xbf16>
    %c0_24 = arith.constant 0 : index
    %c0_25 = arith.constant 0 : index
    %45 = vector.load %arg7[%c0_24, %c0_25] : memref<32x192xbf16, #tpu.memory_space<vmem>>, vector<32x192xbf16>
    %cst_26 = arith.constant dense<0.000000e+00> : vector<32x192xf32>
    %46 = tpu.matmul %39, %45, %cst_26 {dimension_numbers = #tpu.dot_dimension_numbers<[1], [0], [0], [1], [0, 0, 1, 1], [], []>} : vector<32x32xbf16>, vector<32x192xbf16>, vector<32x192xf32> -> vector<32x192xf32>
    %47 = vector.shape_cast %46 : vector<32x192xf32> to vector<8x4x192xf32>
    %cst_27 = arith.constant dense<0.000000e+00> : vector<4x192xf32>
    %48 = tpu.matmul %44, %45, %cst_27 {dimension_numbers = #tpu.dot_dimension_numbers<[1], [0], [0], [1], [0, 0, 1, 1], [], []>} : vector<4x32xbf16>, vector<32x192xbf16>, vector<4x192xf32> -> vector<4x192xf32>
    %49 = vector.shape_cast %48 : vector<4x192xf32> to vector<1x4x192xf32>
    %50 = vector.extract_strided_slice %47 {offsets = [0, 0, 0], sizes = [7, 4, 192], strides = [1, 1, 1]} : vector<8x4x192xf32> to vector<7x4x192xf32>
    %51 = tpu.concatenate %49, %50 in 0 : vector<1x4x192xf32>, vector<7x4x192xf32> -> vector<8x4x192xf32>
    %52 = vector.extract_strided_slice %47 {offsets = [0, 0, 0], sizes = [8, 4, 32], strides = [1, 1, 1]} : vector<8x4x192xf32> to vector<8x4x32xf32>
    %53 = arith.addf %36, %52 : vector<8x4x32xf32>
    %54 = vector.extract_strided_slice %47 {offsets = [0, 0, 32], sizes = [8, 4, 32], strides = [1, 1, 1]} : vector<8x4x192xf32> to vector<8x4x32xf32>
    %55 = arith.addf %31, %54 : vector<8x4x32xf32>
    %56 = vector.extract_strided_slice %47 {offsets = [0, 0, 64], sizes = [8, 4, 32], strides = [1, 1, 1]} : vector<8x4x192xf32> to vector<8x4x32xf32>
    %cst_28 = arith.constant 0.000000e+00 : f32
    %57 = vector.broadcast %cst_28 : f32 to vector<8x1x32xf32>
    %58 = vector.extract_strided_slice %56 {offsets = [0, 0, 0], sizes = [8, 3, 32], strides = [1, 1, 1]} : vector<8x4x32xf32> to vector<8x3x32xf32>
    %59 = tpu.concatenate %57, %58 in 1 : vector<8x1x32xf32>, vector<8x3x32xf32> -> vector<8x4x32xf32>
    %60 = arith.addf %53, %59 : vector<8x4x32xf32>
    %61 = vector.extract_strided_slice %51 {offsets = [0, 0, 96], sizes = [8, 4, 32], strides = [1, 1, 1]} : vector<8x4x192xf32> to vector<8x4x32xf32>
    %62 = arith.addf %60, %61 : vector<8x4x32xf32>
    %63 = vector.extract_strided_slice %51 {offsets = [0, 0, 128], sizes = [8, 4, 32], strides = [1, 1, 1]} : vector<8x4x192xf32> to vector<8x4x32xf32>
    %64 = arith.addf %55, %63 : vector<8x4x32xf32>
    %65 = vector.extract_strided_slice %51 {offsets = [0, 0, 160], sizes = [8, 4, 32], strides = [1, 1, 1]} : vector<8x4x192xf32> to vector<8x4x32xf32>
    %cst_29 = arith.constant 0.000000e+00 : f32
    %66 = vector.broadcast %cst_29 : f32 to vector<8x1x32xf32>
    %67 = vector.extract_strided_slice %65 {offsets = [0, 0, 0], sizes = [8, 3, 32], strides = [1, 1, 1]} : vector<8x4x32xf32> to vector<8x3x32xf32>
    %68 = tpu.concatenate %66, %67 in 1 : vector<8x1x32xf32>, vector<8x3x32xf32> -> vector<8x4x32xf32>
    %69 = arith.addf %62, %68 : vector<8x4x32xf32>
    %70 = tpu.concatenate %69, %64 in 2 : vector<8x4x32xf32>, vector<8x4x32xf32> -> vector<8x4x64xf32>
    %c0_30 = arith.constant 0 : index
    %c0_31 = arith.constant 0 : index
    %71 = vector.load %arg8[%c0_30, %c0_31] : memref<1x64xf32, #tpu.memory_space<vmem>>, vector<1x64xf32>
    %72 = vector.shape_cast %71 : vector<1x64xf32> to vector<64xf32>
    %73 = vector.shape_cast %72 : vector<64xf32> to vector<1x1x64xf32>
    %74 = vector.broadcast %73 : vector<1x1x64xf32> to vector<8x4x64xf32>
    %75 = arith.addf %70, %74 : vector<8x4x64xf32>
    %c0_32 = arith.constant 0 : index
    %c0_33 = arith.constant 0 : index
    %76 = vector.load %arg9[%c0_32, %c0_33] : memref<1x64xf32, #tpu.memory_space<vmem>>, vector<1x64xf32>
    %77 = vector.shape_cast %76 : vector<1x64xf32> to vector<64xf32>
    %cst_34 = arith.constant 0.000000e+00 : f32
    %78 = vector.broadcast %cst_34 : f32 to vector<8x4x64xf32>
    %79 = arith.cmpf oge, %75, %78 : vector<8x4x64xf32>
    %80 = vector.shape_cast %77 : vector<64xf32> to vector<1x1x64xf32>
    %81 = vector.broadcast %80 : vector<1x1x64xf32> to vector<8x4x64xf32>
    %82 = arith.mulf %81, %75 : vector<8x4x64xf32>
    %83 = arith.select %79, %75, %82 : vector<8x4x64xi1>, vector<8x4x64xf32>
    %84 = arith.truncf %83 : vector<8x4x64xf32> to vector<8x4x64xbf16>
    %c0_35 = arith.constant 0 : index
    %c0_36 = arith.constant 0 : index
    %c0_37 = arith.constant 0 : index
    %c0_38 = arith.constant 0 : index
    %85 = vector.load %arg10[%c0_35, %c0_36, %c0_37, %c0_38] : memref<1x8x4x64xbf16, #tpu.memory_space<vmem>>, vector<1x8x4x64xbf16>
    %86 = vector.shape_cast %85 : vector<1x8x4x64xbf16> to vector<8x4x64xbf16>
    %87 = vector.shape_cast %84 : vector<8x4x64xbf16> to vector<1x8x4x64xbf16>
    tpu.vector_store %arg10[%c0_35, %c0_36, %c0_37, %c0_38], %87 {strides = array<i32>} : memref<1x8x4x64xbf16, #tpu.memory_space<vmem>>, vector<1x8x4x64xbf16>,
    return
  }
  func.func @transform_0(%arg0: i32, %arg1: i32) -> (i32, i32, i32, i32) {
    %c0_i32 = arith.constant 0 : i32
    %c0_i32_0 = arith.constant 0 : i32
    %c0_i32_1 = arith.constant 0 : i32
    return %arg0, %arg1, %c0_i32, %c0_i32_0 : i32, i32, i32, i32
  }
  func.func @transform_1(%arg0: i32, %arg1: i32) -> (i32, i32, i32, i32) {
    %c0_i32 = arith.constant 0 : i32
    %c0_i32_0 = arith.constant 0 : i32
    %c0_i32_1 = arith.constant 0 : i32
    return %arg0, %arg1, %c0_i32, %c0_i32_0 : i32, i32, i32, i32
  }
  func.func @transform_2(%arg0: i32, %arg1: i32) -> (i32, i32, i32, i32) {
    %c8_i32 = arith.constant 8 : i32
    %0 = arith.muli %arg1, %c8_i32 : i32
    %c1_i32 = arith.constant 1 : i32
    %1 = arith.subi %0, %c1_i32 : i32
    %c0_i32 = arith.constant 0 : i32
    %2 = arith.maxsi %1, %c0_i32 : i32
    %c0_i32_0 = arith.constant 0 : i32
    %c0_i32_1 = arith.constant 0 : i32
    %c0_i32_2 = arith.constant 0 : i32
    return %arg0, %2, %c0_i32_0, %c0_i32_1 : i32, i32, i32, i32
  }
  func.func @transform_3(%arg0: i32, %arg1: i32) -> (i32, i32, i32, i32) {
    %c8_i32 = arith.constant 8 : i32
    %0 = arith.muli %arg1, %c8_i32 : i32
    %c1_i32 = arith.constant 1 : i32
    %1 = arith.subi %0, %c1_i32 : i32
    %c0_i32 = arith.constant 0 : i32
    %2 = arith.maxsi %1, %c0_i32 : i32
    %c0_i32_0 = arith.constant 0 : i32
    %c0_i32_1 = arith.constant 0 : i32
    %c0_i32_2 = arith.constant 0 : i32
    return %arg0, %2, %c0_i32_0, %c0_i32_1 : i32, i32, i32, i32
  }
  func.func @transform_4(%arg0: i32, %arg1: i32) -> (i32, i32) {
    %c0_i32 = arith.constant 0 : i32
    %c0_i32_0 = arith.constant 0 : i32
    %c0_i32_1 = arith.constant 0 : i32
    return %c0_i32, %c0_i32_0 : i32, i32
  }
  func.func @transform_5(%arg0: i32, %arg1: i32) -> (i32, i32) {
    %c0_i32 = arith.constant 0 : i32
    %c0_i32_0 = arith.constant 0 : i32
    %c0_i32_1 = arith.constant 0 : i32
    return %c0_i32, %c0_i32_0 : i32, i32
  }
  func.func @transform_6(%arg0: i32, %arg1: i32) -> (i32, i32) {
    %c0_i32 = arith.constant 0 : i32
    %c0_i32_0 = arith.constant 0 : i32
    %c0_i32_1 = arith.constant 0 : i32
    return %c0_i32, %c0_i32_0 : i32, i32
  }
  func.func @transform_7(%arg0: i32, %arg1: i32) -> (i32, i32) {
    %c0_i32 = arith.constant 0 : i32
    %c0_i32_0 = arith.constant 0 : i32
    %c0_i32_1 = arith.constant 0 : i32
    return %c0_i32, %c0_i32_0 : i32, i32
  }
  func.func @transform_8(%arg0: i32, %arg1: i32) -> (i32, i32, i32, i32) {
    %c0_i32 = arith.constant 0 : i32
    %c0_i32_0 = arith.constant 0 : i32
    %c0_i32_1 = arith.constant 0 : i32
    return %arg0, %arg1, %c0_i32, %c0_i32_0 : i32, i32, i32, i32
  }
}

module attributes {stable_mosaic.version = 11 : i64} {
  func.func @_stage_kernel(%arg0: i32, %arg1: i32, %arg2: memref<1x8x8x32xbf16, #tpu.memory_space<vmem>>, %arg3: memref<1x8x8x32xbf16, #tpu.memory_space<vmem>>, %arg4: memref<1x1x8x32xbf16, #tpu.memory_space<vmem>>, %arg5: memref<1x1x8x32xbf16, #tpu.memory_space<vmem>>, %arg6: memref<32x10xbf16, #tpu.memory_space<vmem>>, %arg7: memref<32x10xbf16, #tpu.memory_space<vmem>>, %arg8: memref<1x2xf32, #tpu.memory_space<vmem>>, %arg9: memref<1x2xf32, #tpu.memory_space<vmem>>, %arg10: memref<1x8x9x2xf32, #tpu.memory_space<vmem>>) attributes {dimension_semantics = [#tpu.dimension_semantics<parallel>, #tpu.dimension_semantics<parallel>], iteration_bounds = array<i64: 2, 1>, scalar_prefetch = 0 : i64, scratch_operands = 0 : i64, tpu.core_type = #tpu.core_type<tc>, window_params = [{transform_indices = @transform_0, window_bounds = array<i64: 1, 8, 8, 32>}, {transform_indices = @transform_1, window_bounds = array<i64: 1, 8, 8, 32>}, {transform_indices = @transform_2, window_bounds = array<i64: 1, 1, 8, 32>}, {transform_indices = @transform_3, window_bounds = array<i64: 1, 1, 8, 32>}, {pipeline_mode = #tpu.pipeline_mode<synchronous>, transform_indices = @transform_4, window_bounds = array<i64: 32, 10>}, {pipeline_mode = #tpu.pipeline_mode<synchronous>, transform_indices = @transform_5, window_bounds = array<i64: 32, 10>}, {pipeline_mode = #tpu.pipeline_mode<synchronous>, transform_indices = @transform_6, window_bounds = array<i64: 1, 2>}, {pipeline_mode = #tpu.pipeline_mode<synchronous>, transform_indices = @transform_7, window_bounds = array<i64: 1, 2>}, {transform_indices = @transform_8, window_bounds = array<i64: 1, 8, 9, 2>}]} {
    %c0_i32 = arith.constant 0 : i32
    %0 = arith.cmpi eq, %arg1, %c0_i32 : i32
    %cst = arith.constant 0.000000e+00 : f32
    %cst_0 = arith.constant 1.000000e+00 : f32
    %1 = arith.select %0, %cst, %cst_0 : f32
    %cst_1 = arith.constant 0.000000e+00 : f32
    %2 = vector.broadcast %cst_1 : f32 to vector<8x9x1xf32>
    %cst_2 = arith.constant 0.000000e+00 : f32
    %3 = vector.broadcast %cst_2 : f32 to vector<8x9x1xf32>
    %c0 = arith.constant 0 : index
    %c0_3 = arith.constant 0 : index
    %c0_4 = arith.constant 0 : index
    %c0_5 = arith.constant 0 : index
    %4 = vector.load %arg2[%c0, %c0_3, %c0_4, %c0_5] : memref<1x8x8x32xbf16, #tpu.memory_space<vmem>>, vector<1x8x8x32xbf16>
    %5 = vector.shape_cast %4 : vector<1x8x8x32xbf16> to vector<8x8x32xbf16>
    %6 = vector.shape_cast %5 : vector<8x8x32xbf16> to vector<64x32xbf16>
    %c0_6 = arith.constant 0 : index
    %c0_7 = arith.constant 0 : index
    %c0_8 = arith.constant 0 : index
    %c0_9 = arith.constant 0 : index
    %7 = vector.load %arg4[%c0_6, %c0_7, %c0_8, %c0_9] : memref<1x1x8x32xbf16, #tpu.memory_space<vmem>>, vector<1x1x8x32xbf16>
    %8 = vector.shape_cast %7 : vector<1x1x8x32xbf16> to vector<8x32xbf16>
    %9 = arith.truncf %1 : f32 to bf16
    %10 = vector.broadcast %9 : bf16 to vector<8x32xbf16>
    %11 = arith.mulf %8, %10 : vector<8x32xbf16>
    %c0_10 = arith.constant 0 : index
    %c0_11 = arith.constant 0 : index
    %12 = vector.load %arg6[%c0_10, %c0_11] : memref<32x10xbf16, #tpu.memory_space<vmem>>, vector<32x10xbf16>
    %cst_12 = arith.constant dense<0.000000e+00> : vector<64x10xf32>
    %13 = tpu.matmul %6, %12, %cst_12 {dimension_numbers = #tpu.dot_dimension_numbers<[1], [0], [0], [1], [0, 0, 1, 1], [], []>} : vector<64x32xbf16>, vector<32x10xbf16>, vector<64x10xf32> -> vector<64x10xf32>
    %14 = vector.shape_cast %13 : vector<64x10xf32> to vector<8x8x10xf32>
    %cst_13 = arith.constant dense<0.000000e+00> : vector<8x10xf32>
    %15 = tpu.matmul %11, %12, %cst_13 {dimension_numbers = #tpu.dot_dimension_numbers<[1], [0], [0], [1], [0, 0, 1, 1], [], []>} : vector<8x32xbf16>, vector<32x10xbf16>, vector<8x10xf32> -> vector<8x10xf32>
    %16 = vector.shape_cast %15 : vector<8x10xf32> to vector<1x8x10xf32>
    %17 = vector.extract_strided_slice %14 {offsets = [0, 0, 0], sizes = [7, 8, 10], strides = [1, 1, 1]} : vector<8x8x10xf32> to vector<7x8x10xf32>
    %18 = tpu.concatenate %16, %17 in 0 : vector<1x8x10xf32>, vector<7x8x10xf32> -> vector<8x8x10xf32>
    %19 = vector.extract_strided_slice %14 {offsets = [0, 0, 0], sizes = [8, 8, 1], strides = [1, 1, 1]} : vector<8x8x10xf32> to vector<8x8x1xf32>
    %cst_14 = arith.constant 0.000000e+00 : f32
    %20 = vector.broadcast %cst_14 : f32 to vector<8x1x1xf32>
    %21 = tpu.concatenate %19, %20 in 1 : vector<8x8x1xf32>, vector<8x1x1xf32> -> vector<8x9x1xf32>
    %22 = arith.addf %2, %21 : vector<8x9x1xf32>
    %23 = vector.extract_strided_slice %14 {offsets = [0, 0, 1], sizes = [8, 8, 1], strides = [1, 1, 1]} : vector<8x8x10xf32> to vector<8x8x1xf32>
    %cst_15 = arith.constant 0.000000e+00 : f32
    %24 = vector.broadcast %cst_15 : f32 to vector<8x1x1xf32>
    %25 = tpu.concatenate %23, %24 in 1 : vector<8x8x1xf32>, vector<8x1x1xf32> -> vector<8x9x1xf32>
    %26 = arith.addf %3, %25 : vector<8x9x1xf32>
    %27 = vector.extract_strided_slice %14 {offsets = [0, 0, 2], sizes = [8, 8, 1], strides = [1, 1, 1]} : vector<8x8x10xf32> to vector<8x8x1xf32>
    %cst_16 = arith.constant 0.000000e+00 : f32
    %28 = vector.broadcast %cst_16 : f32 to vector<8x1x1xf32>
    %29 = tpu.concatenate %28, %27 in 1 : vector<8x1x1xf32>, vector<8x8x1xf32> -> vector<8x9x1xf32>
    %30 = arith.addf %22, %29 : vector<8x9x1xf32>
    %31 = vector.extract_strided_slice %14 {offsets = [0, 0, 3], sizes = [8, 8, 1], strides = [1, 1, 1]} : vector<8x8x10xf32> to vector<8x8x1xf32>
    %cst_17 = arith.constant 0.000000e+00 : f32
    %32 = vector.broadcast %cst_17 : f32 to vector<8x1x1xf32>
    %33 = tpu.concatenate %32, %31 in 1 : vector<8x1x1xf32>, vector<8x8x1xf32> -> vector<8x9x1xf32>
    %34 = arith.addf %26, %33 : vector<8x9x1xf32>
    %35 = vector.extract_strided_slice %14 {offsets = [0, 0, 4], sizes = [8, 8, 1], strides = [1, 1, 1]} : vector<8x8x10xf32> to vector<8x8x1xf32>
    %cst_18 = arith.constant 0.000000e+00 : f32
    %36 = vector.broadcast %cst_18 : f32 to vector<8x2x1xf32>
    %37 = vector.extract_strided_slice %35 {offsets = [0, 0, 0], sizes = [8, 7, 1], strides = [1, 1, 1]} : vector<8x8x1xf32> to vector<8x7x1xf32>
    %38 = tpu.concatenate %36, %37 in 1 : vector<8x2x1xf32>, vector<8x7x1xf32> -> vector<8x9x1xf32>
    %39 = arith.addf %30, %38 : vector<8x9x1xf32>
    %40 = vector.extract_strided_slice %18 {offsets = [0, 0, 5], sizes = [8, 8, 1], strides = [1, 1, 1]} : vector<8x8x10xf32> to vector<8x8x1xf32>
    %cst_19 = arith.constant 0.000000e+00 : f32
    %41 = vector.broadcast %cst_19 : f32 to vector<8x1x1xf32>
    %42 = tpu.concatenate %40, %41 in 1 : vector<8x8x1xf32>, vector<8x1x1xf32> -> vector<8x9x1xf32>
    %43 = arith.addf %39, %42 : vector<8x9x1xf32>
    %44 = vector.extract_strided_slice %18 {offsets = [0, 0, 6], sizes = [8, 8, 1], strides = [1, 1, 1]} : vector<8x8x10xf32> to vector<8x8x1xf32>
    %cst_20 = arith.constant 0.000000e+00 : f32
    %45 = vector.broadcast %cst_20 : f32 to vector<8x1x1xf32>
    %46 = tpu.concatenate %44, %45 in 1 : vector<8x8x1xf32>, vector<8x1x1xf32> -> vector<8x9x1xf32>
    %47 = arith.addf %34, %46 : vector<8x9x1xf32>
    %48 = vector.extract_strided_slice %18 {offsets = [0, 0, 7], sizes = [8, 8, 1], strides = [1, 1, 1]} : vector<8x8x10xf32> to vector<8x8x1xf32>
    %cst_21 = arith.constant 0.000000e+00 : f32
    %49 = vector.broadcast %cst_21 : f32 to vector<8x1x1xf32>
    %50 = tpu.concatenate %49, %48 in 1 : vector<8x1x1xf32>, vector<8x8x1xf32> -> vector<8x9x1xf32>
    %51 = arith.addf %43, %50 : vector<8x9x1xf32>
    %52 = vector.extract_strided_slice %18 {offsets = [0, 0, 8], sizes = [8, 8, 1], strides = [1, 1, 1]} : vector<8x8x10xf32> to vector<8x8x1xf32>
    %cst_22 = arith.constant 0.000000e+00 : f32
    %53 = vector.broadcast %cst_22 : f32 to vector<8x1x1xf32>
    %54 = tpu.concatenate %53, %52 in 1 : vector<8x1x1xf32>, vector<8x8x1xf32> -> vector<8x9x1xf32>
    %55 = arith.addf %47, %54 : vector<8x9x1xf32>
    %56 = vector.extract_strided_slice %18 {offsets = [0, 0, 9], sizes = [8, 8, 1], strides = [1, 1, 1]} : vector<8x8x10xf32> to vector<8x8x1xf32>
    %cst_23 = arith.constant 0.000000e+00 : f32
    %57 = vector.broadcast %cst_23 : f32 to vector<8x2x1xf32>
    %58 = vector.extract_strided_slice %56 {offsets = [0, 0, 0], sizes = [8, 7, 1], strides = [1, 1, 1]} : vector<8x8x1xf32> to vector<8x7x1xf32>
    %59 = tpu.concatenate %57, %58 in 1 : vector<8x2x1xf32>, vector<8x7x1xf32> -> vector<8x9x1xf32>
    %60 = arith.addf %51, %59 : vector<8x9x1xf32>
    %c0_24 = arith.constant 0 : index
    %c0_25 = arith.constant 0 : index
    %c0_26 = arith.constant 0 : index
    %c0_27 = arith.constant 0 : index
    %61 = vector.load %arg3[%c0_24, %c0_25, %c0_26, %c0_27] : memref<1x8x8x32xbf16, #tpu.memory_space<vmem>>, vector<1x8x8x32xbf16>
    %62 = vector.shape_cast %61 : vector<1x8x8x32xbf16> to vector<8x8x32xbf16>
    %63 = vector.shape_cast %62 : vector<8x8x32xbf16> to vector<64x32xbf16>
    %c0_28 = arith.constant 0 : index
    %c0_29 = arith.constant 0 : index
    %c0_30 = arith.constant 0 : index
    %c0_31 = arith.constant 0 : index
    %64 = vector.load %arg5[%c0_28, %c0_29, %c0_30, %c0_31] : memref<1x1x8x32xbf16, #tpu.memory_space<vmem>>, vector<1x1x8x32xbf16>
    %65 = vector.shape_cast %64 : vector<1x1x8x32xbf16> to vector<8x32xbf16>
    %66 = arith.truncf %1 : f32 to bf16
    %67 = vector.broadcast %66 : bf16 to vector<8x32xbf16>
    %68 = arith.mulf %65, %67 : vector<8x32xbf16>
    %c0_32 = arith.constant 0 : index
    %c0_33 = arith.constant 0 : index
    %69 = vector.load %arg7[%c0_32, %c0_33] : memref<32x10xbf16, #tpu.memory_space<vmem>>, vector<32x10xbf16>
    %cst_34 = arith.constant dense<0.000000e+00> : vector<64x10xf32>
    %70 = tpu.matmul %63, %69, %cst_34 {dimension_numbers = #tpu.dot_dimension_numbers<[1], [0], [0], [1], [0, 0, 1, 1], [], []>} : vector<64x32xbf16>, vector<32x10xbf16>, vector<64x10xf32> -> vector<64x10xf32>
    %71 = vector.shape_cast %70 : vector<64x10xf32> to vector<8x8x10xf32>
    %cst_35 = arith.constant dense<0.000000e+00> : vector<8x10xf32>
    %72 = tpu.matmul %68, %69, %cst_35 {dimension_numbers = #tpu.dot_dimension_numbers<[1], [0], [0], [1], [0, 0, 1, 1], [], []>} : vector<8x32xbf16>, vector<32x10xbf16>, vector<8x10xf32> -> vector<8x10xf32>
    %73 = vector.shape_cast %72 : vector<8x10xf32> to vector<1x8x10xf32>
    %74 = vector.extract_strided_slice %71 {offsets = [0, 0, 0], sizes = [7, 8, 10], strides = [1, 1, 1]} : vector<8x8x10xf32> to vector<7x8x10xf32>
    %75 = tpu.concatenate %73, %74 in 0 : vector<1x8x10xf32>, vector<7x8x10xf32> -> vector<8x8x10xf32>
    %76 = vector.extract_strided_slice %71 {offsets = [0, 0, 0], sizes = [8, 8, 1], strides = [1, 1, 1]} : vector<8x8x10xf32> to vector<8x8x1xf32>
    %cst_36 = arith.constant 0.000000e+00 : f32
    %77 = vector.broadcast %cst_36 : f32 to vector<8x1x1xf32>
    %78 = tpu.concatenate %76, %77 in 1 : vector<8x8x1xf32>, vector<8x1x1xf32> -> vector<8x9x1xf32>
    %79 = arith.addf %60, %78 : vector<8x9x1xf32>
    %80 = vector.extract_strided_slice %71 {offsets = [0, 0, 1], sizes = [8, 8, 1], strides = [1, 1, 1]} : vector<8x8x10xf32> to vector<8x8x1xf32>
    %cst_37 = arith.constant 0.000000e+00 : f32
    %81 = vector.broadcast %cst_37 : f32 to vector<8x1x1xf32>
    %82 = tpu.concatenate %80, %81 in 1 : vector<8x8x1xf32>, vector<8x1x1xf32> -> vector<8x9x1xf32>
    %83 = arith.addf %55, %82 : vector<8x9x1xf32>
    %84 = vector.extract_strided_slice %71 {offsets = [0, 0, 2], sizes = [8, 8, 1], strides = [1, 1, 1]} : vector<8x8x10xf32> to vector<8x8x1xf32>
    %cst_38 = arith.constant 0.000000e+00 : f32
    %85 = vector.broadcast %cst_38 : f32 to vector<8x1x1xf32>
    %86 = tpu.concatenate %85, %84 in 1 : vector<8x1x1xf32>, vector<8x8x1xf32> -> vector<8x9x1xf32>
    %87 = arith.addf %79, %86 : vector<8x9x1xf32>
    %88 = vector.extract_strided_slice %71 {offsets = [0, 0, 3], sizes = [8, 8, 1], strides = [1, 1, 1]} : vector<8x8x10xf32> to vector<8x8x1xf32>
    %cst_39 = arith.constant 0.000000e+00 : f32
    %89 = vector.broadcast %cst_39 : f32 to vector<8x1x1xf32>
    %90 = tpu.concatenate %89, %88 in 1 : vector<8x1x1xf32>, vector<8x8x1xf32> -> vector<8x9x1xf32>
    %91 = arith.addf %83, %90 : vector<8x9x1xf32>
    %92 = vector.extract_strided_slice %71 {offsets = [0, 0, 4], sizes = [8, 8, 1], strides = [1, 1, 1]} : vector<8x8x10xf32> to vector<8x8x1xf32>
    %cst_40 = arith.constant 0.000000e+00 : f32
    %93 = vector.broadcast %cst_40 : f32 to vector<8x2x1xf32>
    %94 = vector.extract_strided_slice %92 {offsets = [0, 0, 0], sizes = [8, 7, 1], strides = [1, 1, 1]} : vector<8x8x1xf32> to vector<8x7x1xf32>
    %95 = tpu.concatenate %93, %94 in 1 : vector<8x2x1xf32>, vector<8x7x1xf32> -> vector<8x9x1xf32>
    %96 = arith.addf %87, %95 : vector<8x9x1xf32>
    %97 = vector.extract_strided_slice %75 {offsets = [0, 0, 5], sizes = [8, 8, 1], strides = [1, 1, 1]} : vector<8x8x10xf32> to vector<8x8x1xf32>
    %cst_41 = arith.constant 0.000000e+00 : f32
    %98 = vector.broadcast %cst_41 : f32 to vector<8x1x1xf32>
    %99 = tpu.concatenate %97, %98 in 1 : vector<8x8x1xf32>, vector<8x1x1xf32> -> vector<8x9x1xf32>
    %100 = arith.addf %96, %99 : vector<8x9x1xf32>
    %101 = vector.extract_strided_slice %75 {offsets = [0, 0, 6], sizes = [8, 8, 1], strides = [1, 1, 1]} : vector<8x8x10xf32> to vector<8x8x1xf32>
    %cst_42 = arith.constant 0.000000e+00 : f32
    %102 = vector.broadcast %cst_42 : f32 to vector<8x1x1xf32>
    %103 = tpu.concatenate %101, %102 in 1 : vector<8x8x1xf32>, vector<8x1x1xf32> -> vector<8x9x1xf32>
    %104 = arith.addf %91, %103 : vector<8x9x1xf32>
    %105 = vector.extract_strided_slice %75 {offsets = [0, 0, 7], sizes = [8, 8, 1], strides = [1, 1, 1]} : vector<8x8x10xf32> to vector<8x8x1xf32>
    %cst_43 = arith.constant 0.000000e+00 : f32
    %106 = vector.broadcast %cst_43 : f32 to vector<8x1x1xf32>
    %107 = tpu.concatenate %106, %105 in 1 : vector<8x1x1xf32>, vector<8x8x1xf32> -> vector<8x9x1xf32>
    %108 = arith.addf %100, %107 : vector<8x9x1xf32>
    %109 = vector.extract_strided_slice %75 {offsets = [0, 0, 8], sizes = [8, 8, 1], strides = [1, 1, 1]} : vector<8x8x10xf32> to vector<8x8x1xf32>
    %cst_44 = arith.constant 0.000000e+00 : f32
    %110 = vector.broadcast %cst_44 : f32 to vector<8x1x1xf32>
    %111 = tpu.concatenate %110, %109 in 1 : vector<8x1x1xf32>, vector<8x8x1xf32> -> vector<8x9x1xf32>
    %112 = arith.addf %104, %111 : vector<8x9x1xf32>
    %113 = vector.extract_strided_slice %75 {offsets = [0, 0, 9], sizes = [8, 8, 1], strides = [1, 1, 1]} : vector<8x8x10xf32> to vector<8x8x1xf32>
    %cst_45 = arith.constant 0.000000e+00 : f32
    %114 = vector.broadcast %cst_45 : f32 to vector<8x2x1xf32>
    %115 = vector.extract_strided_slice %113 {offsets = [0, 0, 0], sizes = [8, 7, 1], strides = [1, 1, 1]} : vector<8x8x1xf32> to vector<8x7x1xf32>
    %116 = tpu.concatenate %114, %115 in 1 : vector<8x2x1xf32>, vector<8x7x1xf32> -> vector<8x9x1xf32>
    %117 = arith.addf %108, %116 : vector<8x9x1xf32>
    %118 = tpu.concatenate %117, %112 in 2 : vector<8x9x1xf32>, vector<8x9x1xf32> -> vector<8x9x2xf32>
    %c0_46 = arith.constant 0 : index
    %c0_47 = arith.constant 0 : index
    %119 = vector.load %arg8[%c0_46, %c0_47] : memref<1x2xf32, #tpu.memory_space<vmem>>, vector<1x2xf32>
    %120 = vector.shape_cast %119 : vector<1x2xf32> to vector<2xf32>
    %121 = vector.shape_cast %120 : vector<2xf32> to vector<1x1x2xf32>
    %122 = vector.broadcast %121 : vector<1x1x2xf32> to vector<8x9x2xf32>
    %123 = arith.addf %118, %122 : vector<8x9x2xf32>
    %c0_48 = arith.constant 0 : index
    %c0_49 = arith.constant 0 : index
    %124 = vector.load %arg9[%c0_48, %c0_49] : memref<1x2xf32, #tpu.memory_space<vmem>>, vector<1x2xf32>
    %125 = vector.shape_cast %124 : vector<1x2xf32> to vector<2xf32>
    %cst_50 = arith.constant 0.000000e+00 : f32
    %126 = vector.broadcast %cst_50 : f32 to vector<8x9x2xf32>
    %127 = arith.cmpf oge, %123, %126 : vector<8x9x2xf32>
    %128 = vector.shape_cast %125 : vector<2xf32> to vector<1x1x2xf32>
    %129 = vector.broadcast %128 : vector<1x1x2xf32> to vector<8x9x2xf32>
    %130 = arith.mulf %129, %123 : vector<8x9x2xf32>
    %131 = arith.select %127, %123, %130 : vector<8x9x2xi1>, vector<8x9x2xf32>
    %c0_51 = arith.constant 0 : index
    %c0_52 = arith.constant 0 : index
    %c0_53 = arith.constant 0 : index
    %c0_54 = arith.constant 0 : index
    %132 = vector.load %arg10[%c0_51, %c0_52, %c0_53, %c0_54] : memref<1x8x9x2xf32, #tpu.memory_space<vmem>>, vector<1x8x9x2xf32>
    %133 = vector.shape_cast %132 : vector<1x8x9x2xf32> to vector<8x9x2xf32>
    %134 = vector.shape_cast %131 : vector<8x9x2xf32> to vector<1x8x9x2xf32>
    tpu.vector_store %arg10[%c0_51, %c0_52, %c0_53, %c0_54], %134 {strides = array<i32>} : memref<1x8x9x2xf32, #tpu.memory_space<vmem>>, vector<1x8x9x2xf32>,
    return
  }
  func.func @transform_0(%arg0: i32, %arg1: i32) -> (i32, i32, i32, i32) {
    %c0_i32 = arith.constant 0 : i32
    %c0_i32_0 = arith.constant 0 : i32
    %c0_i32_1 = arith.constant 0 : i32
    return %arg0, %arg1, %c0_i32, %c0_i32_0 : i32, i32, i32, i32
  }
  func.func @transform_1(%arg0: i32, %arg1: i32) -> (i32, i32, i32, i32) {
    %c0_i32 = arith.constant 0 : i32
    %c0_i32_0 = arith.constant 0 : i32
    %c0_i32_1 = arith.constant 0 : i32
    return %arg0, %arg1, %c0_i32, %c0_i32_0 : i32, i32, i32, i32
  }
  func.func @transform_2(%arg0: i32, %arg1: i32) -> (i32, i32, i32, i32) {
    %c8_i32 = arith.constant 8 : i32
    %0 = arith.muli %arg1, %c8_i32 : i32
    %c1_i32 = arith.constant 1 : i32
    %1 = arith.subi %0, %c1_i32 : i32
    %c0_i32 = arith.constant 0 : i32
    %2 = arith.maxsi %1, %c0_i32 : i32
    %c0_i32_0 = arith.constant 0 : i32
    %c0_i32_1 = arith.constant 0 : i32
    %c0_i32_2 = arith.constant 0 : i32
    return %arg0, %2, %c0_i32_0, %c0_i32_1 : i32, i32, i32, i32
  }
  func.func @transform_3(%arg0: i32, %arg1: i32) -> (i32, i32, i32, i32) {
    %c8_i32 = arith.constant 8 : i32
    %0 = arith.muli %arg1, %c8_i32 : i32
    %c1_i32 = arith.constant 1 : i32
    %1 = arith.subi %0, %c1_i32 : i32
    %c0_i32 = arith.constant 0 : i32
    %2 = arith.maxsi %1, %c0_i32 : i32
    %c0_i32_0 = arith.constant 0 : i32
    %c0_i32_1 = arith.constant 0 : i32
    %c0_i32_2 = arith.constant 0 : i32
    return %arg0, %2, %c0_i32_0, %c0_i32_1 : i32, i32, i32, i32
  }
  func.func @transform_4(%arg0: i32, %arg1: i32) -> (i32, i32) {
    %c0_i32 = arith.constant 0 : i32
    %c0_i32_0 = arith.constant 0 : i32
    %c0_i32_1 = arith.constant 0 : i32
    return %c0_i32, %c0_i32_0 : i32, i32
  }
  func.func @transform_5(%arg0: i32, %arg1: i32) -> (i32, i32) {
    %c0_i32 = arith.constant 0 : i32
    %c0_i32_0 = arith.constant 0 : i32
    %c0_i32_1 = arith.constant 0 : i32
    return %c0_i32, %c0_i32_0 : i32, i32
  }
  func.func @transform_6(%arg0: i32, %arg1: i32) -> (i32, i32) {
    %c0_i32 = arith.constant 0 : i32
    %c0_i32_0 = arith.constant 0 : i32
    %c0_i32_1 = arith.constant 0 : i32
    return %c0_i32, %c0_i32_0 : i32, i32
  }
  func.func @transform_7(%arg0: i32, %arg1: i32) -> (i32, i32) {
    %c0_i32 = arith.constant 0 : i32
    %c0_i32_0 = arith.constant 0 : i32
    %c0_i32_1 = arith.constant 0 : i32
    return %c0_i32, %c0_i32_0 : i32, i32
  }
  func.func @transform_8(%arg0: i32, %arg1: i32) -> (i32, i32, i32, i32) {
    %c0_i32 = arith.constant 0 : i32
    %c0_i32_0 = arith.constant 0 : i32
    %c0_i32_1 = arith.constant 0 : i32
    return %arg0, %arg1, %c0_i32, %c0_i32_0 : i32, i32, i32, i32
  }
}

</mosaic_0001>

<bundles_post_ra>
// kernel: tile.35
= control target key start
LH: loop header
LB: loop body
LE: loop exit
PB: predicated region body
PF: predicated region fallthrough
CT: control target
= control target key end

     0   :  { %s22_s0 = inlined_call_operand.vmem [shape: f32[32], index: 0, kind: input, shape index: {}]   ;;  %s23_s1 = inlined_call_operand.vmem [shape: f32[2,32], index: 1, kind: output, shape index: {}]  }
   0x1   :  { %v4_v0 = vld [vmem:[%s22_s0] ss:$0 sm:$0xff] }
   0x2   :  { %5 = vst [vmem:[%s23_s1] sm:$0x3] %v4_v0 }

// kernel: tile.36
= control target key start
LH: loop header
LB: loop body
LE: loop exit
PB: predicated region body
PF: predicated region fallthrough
CT: control target
= control target key end

     0   :  { %vm8_vm0 = vcmask 261120   ;;  %vm14_vm1 = vcmask 523520   ;;  %s42_s0 = inlined_call_operand.vmem [shape: f32[2,32], index: 0, kind: input, shape index: {}]   ;;  %s43_s1 = inlined_call_operand.vmem [shape: f32[1,64], index: 1, kind: output, shape index: {}]  }
   0x1   :  { %v5_v0 = vld [vmem:[%s42_s0] sm:$0x3]  ;;  %s25_s0 = smov 32  }
   0x2   :  { %6 = vst [vmem:[#allocation1] sm:$0x3] %v5_v0 }
   0x9   :  { %v11_v1 = vld [vmem:[#allocation1 + $0x1] sm:$0x1]   ;;  %v7_v2 = vld [vmem:[#allocation1] sm:$0x1]  }
   0xa   :  { %12 = vrot.lane.b32.xlu0 %v11_v1, %s25_s0  ;;  %9 = vst.msk [vmem:[#allocation0] sm:$0x1] %vm8_vm0, %v7_v2  }
  0x7c   :  { %v13_v3 = vpop.permute.xlu0 %12  }
  0x7d   :  { %15 = vst.msk [vmem:[#allocation0] sm:$0x1] %vm14_vm1, %v13_v3  }
  0x84   :  { %v20_v4 = vld [vmem:[#allocation0] sm:$0x1] }
  0x85   :  { %23 = vst [vmem:[%s43_s1] sm:$0x1] %v20_v4 }

</bundles_post_ra>
